<compile_context>
chip_gen: v7x
topology: tpu7x:2x2x1
jax: 0.10.0
libtpu: 0.0.40
codegen_flags: <defaults>
</compile_context>

<pallas_src>
import functools

import jax
import jax.numpy as jnp
from jax import lax
from jax.experimental import pallas as pl
from jax.experimental.pallas import tpu as pltpu


def _ru(x, m):
    return ((x + m - 1) // m) * m


# ---------------------------------------------------------------------------
# Pallas kernels
# ---------------------------------------------------------------------------
def _matmul_stats_kernel(a_ref, b_ref, y_ref, s1_ref, s2_ref):
    """(tm,K)@(K,tn): bf16 operands, f32 MXU accumulation, bf16 activation
    store, plus per-column sum / sum-of-squares (f32) for BatchNorm stats.
    Zero-padded A rows contribute 0 to both sums (the true row count is used
    by the caller), so the batch statistics stay exact."""
    acc = jnp.dot(a_ref[0], b_ref[0], preferred_element_type=jnp.float32)
    y_ref[0] = acc.astype(y_ref.dtype)
    s1_ref[0] = jnp.sum(acc, axis=0, keepdims=True)
    s2_ref[0] = jnp.sum(acc * acc, axis=0, keepdims=True)


def _matmul_kernel(a_ref, b_ref, y_ref):
    acc = jnp.dot(a_ref[0], b_ref[0], preferred_element_type=jnp.float32)
    y_ref[0] = acc.astype(y_ref.dtype)


# ---------------------------------------------------------------------------
# Pallas wrapper
# ---------------------------------------------------------------------------
def pallas_phase_matmul(a, b, *, with_stats, tm_max=512,
                        vmem_budget=24 * 1024 * 1024):
    """Batched MXU matmul y[g] = a[g] @ b[g].

    a: (G, M, K)    bf16 (zero M-padding added here if needed; K unpadded)
    b: (G, K, Npad) bf16, Npad a multiple of 128 (pre-padded weights)
    with_stats: also return per-column sum / sum-of-squares of the f32 result.
    Returns y (G, Mp, Npad) bf16 [, s1, s2 of shape (G, grid_m, Npad) f32].
    """
    G, M, K = a.shape
    Gb, Kb, Npad = b.shape
    assert G == Gb and K == Kb and Npad % 128 == 0

    # Row tile: biggest that keeps the double-buffered working set
    # (A + y tiles + weights) well inside every generation's VMEM (v7x: 64 MiB
    # physical / 32 MiB scoped default).
    tm = min(tm_max, _ru(M, 16))
    while tm > 16:
        footprint = 2 * (tm * K + tm * Npad + K * Npad) * 2 + 4 * Npad * 4
        if footprint <= vmem_budget:
            break
        tm = max(16, _ru(tm // 2, 16))
    Mp = _ru(M, tm)
    grid_m = Mp // tm
    assert Mp % tm == 0

    # Guarantee >=2 "parallel" blocks so v7x's two TensorCores both get work.
    if G * grid_m >= 2 or (Npad // 2) % 128 != 0:
        tn = Npad
    else:
        tn = Npad // 2
    grid_n = Npad // tn

    a = a.astype(jnp.bfloat16)                 # no-op when already bf16
    if Mp != M:
        a = jnp.pad(a, ((0, 0), (0, Mp - M), (0, 0)))   # zero rows -> zero stats

    in_specs = [pl.BlockSpec((1, tm, K), lambda g, i, j: (g, i, 0)),
                pl.BlockSpec((1, K, tn), lambda g, i, j: (g, 0, j))]
    y_spec = pl.BlockSpec((1, tm, tn), lambda g, i, j: (g, i, j))
    stat_spec = pl.BlockSpec((1, 1, tn), lambda g, i, j: (g, i, j))

    if with_stats:
        kernel = _matmul_stats_kernel
        out_shape = (jax.ShapeDtypeStruct((G, Mp, Npad), jnp.bfloat16),
                     jax.ShapeDtypeStruct((G, grid_m, Npad), jnp.float32),
                     jax.ShapeDtypeStruct((G, grid_m, Npad), jnp.float32))
        out_specs = (y_spec, stat_spec, stat_spec)
    else:
        kernel = _matmul_kernel
        out_shape = jax.ShapeDtypeStruct((G, Mp, Npad), jnp.bfloat16)
        out_specs = y_spec

    return pl.pallas_call(
        kernel,
        out_shape=out_shape,
        grid_spec=pltpu.PrefetchScalarGridSpec(
            num_scalar_prefetch=0,
            grid=(G, grid_m, grid_n),
            in_specs=in_specs,
            out_specs=out_specs),
        compiler_params=pltpu.CompilerParams(
            dimension_semantics=("parallel", "parallel", "parallel"),
            vmem_limit_bytes=32 * 1024 * 1024),
    )(a, b)


# ---------------------------------------------------------------------------
# XLA glue: BN scale/shift math, sub-pixel im2col, phase interleave
# ---------------------------------------------------------------------------
def _bn_scale_shift(sum_c, sumsq_c, count, gamma, beta, eps=1e-5):
    mean = sum_c / count
    var = jnp.maximum(sumsq_c / count - mean * mean, 0.0)   # biased (PyTorch BN)
    scale = gamma * lax.rsqrt(var + eps)
    shift = beta - mean * scale
    return scale, shift


def _phase_im2col(x_nhwc):
    """Sub-pixel A matrices for a stride-2, pad-1, 4x4 ConvTranspose2d.

    x_nhwc: (N, H, W, Cin) bf16 -> (4, N*H*W, 4*Cin) bf16;
    phase g = 2*(ho%2) + (wo%2).  Output pixel (2q+py, 2r+px) depends on
    padded-input rows q+py..q+py+1 / cols r+px..r+px+1 with weight indices
    (3-py-2a, 3-px-2b).  Built once, directly in bf16 (no later cast/pad).
    """
    n, h, w, cin = x_nhwc.shape
    xp = jnp.pad(x_nhwc, ((0, 0), (1, 1), (1, 1), (0, 0)))
    phases = []
    for py in (0, 1):
        for px in (0, 1):
            cols = [xp[:, py + a:py + a + h, px + b:px + b + w, :]
                    for a in (0, 1) for b in (0, 1)]
            phases.append(jnp.concatenate(cols, axis=-1).reshape(n * h * w, 4 * cin))
    return jnp.stack(phases, axis=0)


def _interleave_phases(yp, n, h, w, c):
    """(4, N*H*W, C) phase-major -> (N, 2H, 2W, C) NHWC."""
    t = yp.reshape(2, 2, n, h, w, c).transpose(2, 3, 0, 4, 1, 5)
    return t.reshape(n, 2 * h, 2 * w, c)


# ---------------------------------------------------------------------------
# Layers
# ---------------------------------------------------------------------------
def _layer0(z2d, b0, gamma, beta):
    """ConvTranspose2d(z_dim, C, 4, 1, 0) + BN + ReLU on a 1x1 input -> (N,4,4,C)."""
    n = z2d.shape[0]
    c = gamma.shape[0]
    y, s1, s2 = pallas_phase_matmul(z2d[None], b0, with_stats=True)
    s1c = s1.sum(axis=(0, 1))[:16 * c].reshape(16, c).sum(axis=0)
    s2c = s2.sum(axis=(0, 1))[:16 * c].reshape(16, c).sum(axis=0)
    scale, shift = _bn_scale_shift(s1c, s2c, float(n * 16), gamma, beta)
    x = y[0, :n, :16 * c].astype(jnp.float32).reshape(n, 4, 4, c)
    # BN + ReLU fused (by XLA) into the pass that already reads y.
    return jnp.maximum(x * scale + shift, 0.0).astype(jnp.bfloat16)


def _layer_up_bn(x_nhwc, bq, gamma, beta):
    """ConvTranspose2d(Cin, Cout, 4, 2, 1) + BN + ReLU, bf16 NHWC in/out."""
    n, h, w, _ = x_nhwc.shape
    c = gamma.shape[0]
    m = n * h * w
    a = _phase_im2col(x_nhwc)                                # bf16
    y, s1, s2 = pallas_phase_matmul(a, bq, with_stats=True)
    scale, shift = _bn_scale_shift(s1.sum(axis=(0, 1))[:c],
                                   s2.sum(axis=(0, 1))[:c],
                                   float(4 * m), gamma, beta)
    # Apply BN + ReLU before the spatial interleave (and before any spatial
    # zero padding in the next layer), fused by XLA with the slice/interleave.
    yb = jnp.maximum(y[:, :m, :c].astype(jnp.float32) * scale + shift, 0.0)
    return _interleave_phases(yb.astype(jnp.bfloat16), n, h, w, c)


def _layer_up_tanh(x_nhwc, bq, c_out):
    """Final ConvTranspose2d(Cin, nc, 4, 2, 1) + Tanh (tanh on real lanes only)."""
    n, h, w, _ = x_nhwc.shape
    m = n * h * w
    a = _phase_im2col(x_nhwc)
    y = pallas_phase_matmul(a, bq, with_stats=False)
    img = _interleave_phases(y[:, :m, :c_out], n, h, w, c_out)
    return jnp.tanh(img.astype(jnp.float32))


# ---------------------------------------------------------------------------
# One-time parameter preparation + forward
# ---------------------------------------------------------------------------
def prepare_params(params):
    """Hoisted weight prep: phase decomposition, pad N to 128, bf16 cast."""
    prep = {}
    w0 = params["w0"]                                        # (z_dim, C1, 4, 4)
    z_dim, c1 = w0.shape[0], w0.shape[1]
    b0 = jnp.transpose(w0, (0, 2, 3, 1)).reshape(z_dim, 16 * c1)
    npad = _ru(16 * c1, 128)
    prep["B0"] = jnp.pad(b0, ((0, 0), (0, npad - 16 * c1))).astype(jnp.bfloat16)[None]

    for li in range(1, 5):
        w = params[f"w{li}"]                                 # (Cin, Cout, 4, 4)
        cout = w.shape[1]
        mats = []
        for py in (0, 1):
            for px in (0, 1):
                rows = [w[:, :, 3 - py - 2 * a, 3 - px - 2 * b]
                        for a in (0, 1) for b in (0, 1)]
                mats.append(jnp.concatenate(rows, axis=0))   # (4*Cin, Cout)
        bq = jnp.stack(mats, axis=0)                         # (4, 4*Cin, Cout)
        npad = _ru(cout, 128)
        prep[f"B{li}"] = jnp.pad(bq, ((0, 0), (0, 0), (0, npad - cout))) \
            .astype(jnp.bfloat16)

    for li in range(4):
        prep[f"gamma{li}"] = params[f"gamma{li}"].astype(jnp.float32)
        prep[f"beta{li}"] = params[f"beta{li}"].astype(jnp.float32)
    return prep


def generator_forward(z, prep, *, num_channel):
    """z: (N, z_dim, 1, 1) NCHW -> image (N, num_channel, 64, 64) NCHW f32."""
    n, z_dim = z.shape[0], z.shape[1]
    x = _layer0(z.reshape(n, z_dim), prep["B0"], prep["gamma0"], prep["beta0"])
    for li in range(1, 4):
        x = _layer_up_bn(x, prep[f"B{li}"], prep[f"gamma{li}"], prep[f"beta{li}"])
    x = _layer_up_tanh(x, prep["B4"], num_channel)
    return x.transpose(0, 3, 1, 2)                           # NCHW, like PyTorch


# ---------------------------------------------------------------------------
# Pure-f32 reference of the PyTorch module (for validation only)
# ---------------------------------------------------------------------------
def _conv_transpose2d_ref(x, w, stride, pad):
    """x: (N,Cin,H,W), w: (Cin,Cout,kH,kW); PyTorch ConvTranspose2d semantics."""
    n, _, h, wd = x.shape
    _, cout, kh, kw = w.shape
    y = jnp.einsum('nchw,cdkl->ndhwkl', x, w)
    hf = (h - 1) * stride + kh
    wf = (wd - 1) * stride + kw
    full = jnp.zeros((n, cout, hf, wf), jnp.float32)
    for a in range(kh):
        for b in range(kw):
            full = full.at[:, :, a:a + (h - 1) * stride + 1:stride,
                           b:b + (wd - 1) * stride + 1:stride].add(y[..., a, b])
    if pad:
        full = full[:, :, pad:hf - pad, pad:wf - pad]
    return full


def _bn_relu_ref(x, gamma, beta, eps=1e-5):
    mean = x.mean(axis=(0, 2, 3), keepdims=True)
    var = x.var(axis=(0, 2, 3), keepdims=True)               # biased, train mode
    xn = (x - mean) / jnp.sqrt(var + eps)
    return jnp.maximum(xn * gamma[None, :, None, None] + beta[None, :, None, None],
                       0.0)


def generator_reference(z, params):
    x = z
    for li in range(4):
        stride, pad = (1, 0) if li == 0 else (2, 1)
        x = _conv_transpose2d_ref(x, params[f"w{li}"], stride, pad)
        x = _bn_relu_ref(x, params[f"gamma{li}"], params[f"beta{li}"])
    x = _conv_transpose2d_ref(x, params["w4"], 2, 1)
    return jnp.tanh(x)


if __name__ == "__main__":
    # Small shapes consistent with the module: z_dim=16, ngf=8, nc=3, batch=2.
    key = jax.random.PRNGKey(0)
    z_dim, ngf, nc, batch = 16, 8, 3, 2
    chans = [z_dim, ngf * 8, ngf * 4, ngf * 2, ngf, nc]

    keys = jax.random.split(key, 16)
    ki = 0
    params = {}
    for li in range(5):
        params[f"w{li}"] = 0.02 * jax.random.normal(
            keys[ki], (chans[li], chans[li + 1], 4, 4), jnp.float32)
        ki += 1
        if li < 4:
            params[f"gamma{li}"] = 1.0 + 0.02 * jax.random.normal(
                keys[ki], (chans[li + 1],), jnp.float32)
            ki += 1
            params[f"beta{li}"] = jnp.zeros((chans[li + 1],), jnp.float32)

    z = jax.random.normal(keys[ki], (batch, z_dim, 1, 1), jnp.float32)

    prep = prepare_params(params)                            # one-time weight prep
    fwd = jax.jit(functools.partial(generator_forward, num_channel=nc))
    out = jax.block_until_ready(fwd(z, prep))

    assert out.shape == (batch, nc, 64, 64), out.shape
    assert bool(jnp.all(jnp.isfinite(out)))

    # Validate the sub-pixel decomposition + batch-norm math against the pure
    # f32 reference. bf16 MXU operands and bf16 activation storage give ~1e-2
    # relative deviation; a wrong decomposition would be off by O(0.5).
    ref = jax.block_until_ready(jax.jit(generator_reference)(z, params))
    max_err = float(jnp.max(jnp.abs(out - ref)))
    assert max_err < 0.1, f"mismatch vs reference: max abs err {max_err}"

    print("KERNEL_OK")
</pallas_src>

<mosaic_0001>
module attributes {stable_mosaic.version = 11 : i64} {
  func.func @_matmul_stats_kernel(%arg0: i32, %arg1: i32, %arg2: i32, %arg3: memref<1x16x16xbf16, #tpu.memory_space<vmem>>, %arg4: memref<1x16x512xbf16, #tpu.memory_space<vmem>>, %arg5: memref<1x16x512xbf16, #tpu.memory_space<vmem>>, %arg6: memref<1x1x512xf32, #tpu.memory_space<vmem>>, %arg7: memref<1x1x512xf32, #tpu.memory_space<vmem>>) attributes {dimension_semantics = [#tpu.dimension_semantics<parallel>, #tpu.dimension_semantics<parallel>, #tpu.dimension_semantics<parallel>], iteration_bounds = array<i64: 1, 1, 2>, scalar_prefetch = 0 : i64, scratch_operands = 0 : i64, tpu.core_type = #tpu.core_type<tc>, window_params = [{transform_indices = @transform_0, window_bounds = array<i64: 1, 16, 16>}, {transform_indices = @transform_1, window_bounds = array<i64: 1, 16, 512>}, {transform_indices = @transform_2, window_bounds = array<i64: 1, 16, 512>}, {transform_indices = @transform_3, window_bounds = array<i64: 1, 1, 512>}, {transform_indices = @transform_4, window_bounds = array<i64: 1, 1, 512>}]} {
    %c0 = arith.constant 0 : index
    %c0_0 = arith.constant 0 : index
    %c0_1 = arith.constant 0 : index
    %0 = vector.load %arg3[%c0, %c0_0, %c0_1] : memref<1x16x16xbf16, #tpu.memory_space<vmem>>, vector<1x16x16xbf16>
    %1 = vector.shape_cast %0 : vector<1x16x16xbf16> to vector<16x16xbf16>
    %c0_2 = arith.constant 0 : index
    %c0_3 = arith.constant 0 : index
    %c0_4 = arith.constant 0 : index
    %2 = vector.load %arg4[%c0_2, %c0_3, %c0_4] : memref<1x16x512xbf16, #tpu.memory_space<vmem>>, vector<1x16x512xbf16>
    %3 = vector.shape_cast %2 : vector<1x16x512xbf16> to vector<16x512xbf16>
    %cst = arith.constant dense<0.000000e+00> : vector<16x512xf32>
    %4 = tpu.matmul %1, %3, %cst {dimension_numbers = #tpu.dot_dimension_numbers<[1], [0], [0], [1], [0, 0, 1, 1], [], []>} : vector<16x16xbf16>, vector<16x512xbf16>, vector<16x512xf32> -> vector<16x512xf32>
    %5 = arith.truncf %4 : vector<16x512xf32> to vector<16x512xbf16>
    %c0_5 = arith.constant 0 : index
    %c0_6 = arith.constant 0 : index
    %c0_7 = arith.constant 0 : index
    %6 = vector.load %arg5[%c0_5, %c0_6, %c0_7] : memref<1x16x512xbf16, #tpu.memory_space<vmem>>, vector<1x16x512xbf16>
    %7 = vector.shape_cast %6 : vector<1x16x512xbf16> to vector<16x512xbf16>
    %8 = vector.shape_cast %5 : vector<16x512xbf16> to vector<1x16x512xbf16>
    tpu.vector_store %arg5[%c0_5, %c0_6, %c0_7], %8 {strides = array<i32>} : memref<1x16x512xbf16, #tpu.memory_space<vmem>>, vector<1x16x512xbf16>,
    %cst_8 = arith.constant dense<0.000000e+00> : vector<512xf32>
    %9 = vector.multi_reduction <add>, %4, %cst_8 [0] : vector<16x512xf32> to vector<512xf32>
    %10 = vector.shape_cast %9 : vector<512xf32> to vector<1x512xf32>
    %c0_9 = arith.constant 0 : index
    %c0_10 = arith.constant 0 : index
    %c0_11 = arith.constant 0 : index
    %11 = vector.load %arg6[%c0_9, %c0_10, %c0_11] : memref<1x1x512xf32, #tpu.memory_space<vmem>>, vector<1x1x512xf32>
    %12 = vector.shape_cast %11 : vector<1x1x512xf32> to vector<1x512xf32>
    %13 = vector.shape_cast %10 : vector<1x512xf32> to vector<1x1x512xf32>
    tpu.vector_store %arg6[%c0_9, %c0_10, %c0_11], %13 {strides = array<i32>} : memref<1x1x512xf32, #tpu.memory_space<vmem>>, vector<1x1x512xf32>,
    %14 = arith.mulf %4, %4 : vector<16x512xf32>
    %cst_12 = arith.constant dense<0.000000e+00> : vector<512xf32>
    %15 = vector.multi_reduction <add>, %14, %cst_12 [0] : vector<16x512xf32> to vector<512xf32>
    %16 = vector.shape_cast %15 : vector<512xf32> to vector<1x512xf32>
    %c0_13 = arith.constant 0 : index
    %c0_14 = arith.constant 0 : index
    %c0_15 = arith.constant 0 : index
    %17 = vector.load %arg7[%c0_13, %c0_14, %c0_15] : memref<1x1x512xf32, #tpu.memory_space<vmem>>, vector<1x1x512xf32>
    %18 = vector.shape_cast %17 : vector<1x1x512xf32> to vector<1x512xf32>
    %19 = vector.shape_cast %16 : vector<1x512xf32> to vector<1x1x512xf32>
    tpu.vector_store %arg7[%c0_13, %c0_14, %c0_15], %19 {strides = array<i32>} : memref<1x1x512xf32, #tpu.memory_space<vmem>>, vector<1x1x512xf32>,
    return
  }
  func.func @transform_0(%arg0: i32, %arg1: i32, %arg2: i32) -> (i32, i32, i32) {
    %c0_i32 = arith.constant 0 : i32
    %c0_i32_0 = arith.constant 0 : i32
    return %arg0, %arg1, %c0_i32 : i32, i32, i32
  }
  func.func @transform_1(%arg0: i32, %arg1: i32, %arg2: i32) -> (i32, i32, i32) {
    %c0_i32 = arith.constant 0 : i32
    %c0_i32_0 = arith.constant 0 : i32
    return %arg0, %c0_i32, %arg2 : i32, i32, i32
  }
  func.func @transform_2(%arg0: i32, %arg1: i32, %arg2: i32) -> (i32, i32, i32) {
    %c0_i32 = arith.constant 0 : i32
    return %arg0, %arg1, %arg2 : i32, i32, i32
  }
  func.func @transform_3(%arg0: i32, %arg1: i32, %arg2: i32) -> (i32, i32, i32) {
    %c0_i32 = arith.constant 0 : i32
    return %arg0, %arg1, %arg2 : i32, i32, i32
  }
  func.func @transform_4(%arg0: i32, %arg1: i32, %arg2: i32) -> (i32, i32, i32) {
    %c0_i32 = arith.constant 0 : i32
    return %arg0, %arg1, %arg2 : i32, i32, i32
  }
}

module attributes {stable_mosaic.version = 11 : i64} {
  func.func @_matmul_stats_kernel(%arg0: i32, %arg1: i32, %arg2: i32, %arg3: memref<1x32x256xbf16, #tpu.memory_space<vmem>>, %arg4: memref<1x256x128xbf16, #tpu.memory_space<vmem>>, %arg5: memref<1x32x128xbf16, #tpu.memory_space<vmem>>, %arg6: memref<1x1x128xf32, #tpu.memory_space<vmem>>, %arg7: memref<1x1x128xf32, #tpu.memory_space<vmem>>) attributes {dimension_semantics = [#tpu.dimension_semantics<parallel>, #tpu.dimension_semantics<parallel>, #tpu.dimension_semantics<parallel>], iteration_bounds = array<i64: 4, 1, 1>, scalar_prefetch = 0 : i64, scratch_operands = 0 : i64, tpu.core_type = #tpu.core_type<tc>, window_params = [{transform_indices = @transform_0, window_bounds = array<i64: 1, 32, 256>}, {transform_indices = @transform_1, window_bounds = array<i64: 1, 256, 128>}, {transform_indices = @transform_2, window_bounds = array<i64: 1, 32, 128>}, {transform_indices = @transform_3, window_bounds = array<i64: 1, 1, 128>}, {transform_indices = @transform_4, window_bounds = array<i64: 1, 1, 128>}]} {
    %c0 = arith.constant 0 : index
    %c0_0 = arith.constant 0 : index
    %c0_1 = arith.constant 0 : index
    %0 = vector.load %arg3[%c0, %c0_0, %c0_1] : memref<1x32x256xbf16, #tpu.memory_space<vmem>>, vector<1x32x256xbf16>
    %1 = vector.shape_cast %0 : vector<1x32x256xbf16> to vector<32x256xbf16>
    %c0_2 = arith.constant 0 : index
    %c0_3 = arith.constant 0 : index
    %c0_4 = arith.constant 0 : index
    %2 = vector.load %arg4[%c0_2, %c0_3, %c0_4] : memref<1x256x128xbf16, #tpu.memory_space<vmem>>, vector<1x256x128xbf16>
    %3 = vector.shape_cast %2 : vector<1x256x128xbf16> to vector<256x128xbf16>
    %cst = arith.constant dense<0.000000e+00> : vector<32x128xf32>
    %4 = tpu.matmul %1, %3, %cst {dimension_numbers = #tpu.dot_dimension_numbers<[1], [0], [0], [1], [0, 0, 1, 1], [], []>} : vector<32x256xbf16>, vector<256x128xbf16>, vector<32x128xf32> -> vector<32x128xf32>
    %5 = arith.truncf %4 : vector<32x128xf32> to vector<32x128xbf16>
    %c0_5 = arith.constant 0 : index
    %c0_6 = arith.constant 0 : index
    %c0_7 = arith.constant 0 : index
    %6 = vector.load %arg5[%c0_5, %c0_6, %c0_7] : memref<1x32x128xbf16, #tpu.memory_space<vmem>>, vector<1x32x128xbf16>
    %7 = vector.shape_cast %6 : vector<1x32x128xbf16> to vector<32x128xbf16>
    %8 = vector.shape_cast %5 : vector<32x128xbf16> to vector<1x32x128xbf16>
    tpu.vector_store %arg5[%c0_5, %c0_6, %c0_7], %8 {strides = array<i32>} : memref<1x32x128xbf16, #tpu.memory_space<vmem>>, vector<1x32x128xbf16>,
    %cst_8 = arith.constant dense<0.000000e+00> : vector<128xf32>
    %9 = vector.multi_reduction <add>, %4, %cst_8 [0] : vector<32x128xf32> to vector<128xf32>
    %10 = vector.shape_cast %9 : vector<128xf32> to vector<1x128xf32>
    %c0_9 = arith.constant 0 : index
    %c0_10 = arith.constant 0 : index
    %c0_11 = arith.constant 0 : index
    %11 = vector.load %arg6[%c0_9, %c0_10, %c0_11] : memref<1x1x128xf32, #tpu.memory_space<vmem>>, vector<1x1x128xf32>
    %12 = vector.shape_cast %11 : vector<1x1x128xf32> to vector<1x128xf32>
    %13 = vector.shape_cast %10 : vector<1x128xf32> to vector<1x1x128xf32>
    tpu.vector_store %arg6[%c0_9, %c0_10, %c0_11], %13 {strides = array<i32>} : memref<1x1x128xf32, #tpu.memory_space<vmem>>, vector<1x1x128xf32>,
    %14 = arith.mulf %4, %4 : vector<32x128xf32>
    %cst_12 = arith.constant dense<0.000000e+00> : vector<128xf32>
    %15 = vector.multi_reduction <add>, %14, %cst_12 [0] : vector<32x128xf32> to vector<128xf32>
    %16 = vector.shape_cast %15 : vector<128xf32> to vector<1x128xf32>
    %c0_13 = arith.constant 0 : index
    %c0_14 = arith.constant 0 : index
    %c0_15 = arith.constant 0 : index
    %17 = vector.load %arg7[%c0_13, %c0_14, %c0_15] : memref<1x1x128xf32, #tpu.memory_space<vmem>>, vector<1x1x128xf32>
    %18 = vector.shape_cast %17 : vector<1x1x128xf32> to vector<1x128xf32>
    %19 = vector.shape_cast %16 : vector<1x128xf32> to vector<1x1x128xf32>
    tpu.vector_store %arg7[%c0_13, %c0_14, %c0_15], %19 {strides = array<i32>} : memref<1x1x128xf32, #tpu.memory_space<vmem>>, vector<1x1x128xf32>,
    return
  }
  func.func @transform_0(%arg0: i32, %arg1: i32, %arg2: i32) -> (i32, i32, i32) {
    %c0_i32 = arith.constant 0 : i32
    %c0_i32_0 = arith.constant 0 : i32
    return %arg0, %arg1, %c0_i32 : i32, i32, i32
  }
  func.func @transform_1(%arg0: i32, %arg1: i32, %arg2: i32) -> (i32, i32, i32) {
    %c0_i32 = arith.constant 0 : i32
    %c0_i32_0 = arith.constant 0 : i32
    return %arg0, %c0_i32, %arg2 : i32, i32, i32
  }
  func.func @transform_2(%arg0: i32, %arg1: i32, %arg2: i32) -> (i32, i32, i32) {
    %c0_i32 = arith.constant 0 : i32
    return %arg0, %arg1, %arg2 : i32, i32, i32
  }
  func.func @transform_3(%arg0: i32, %arg1: i32, %arg2: i32) -> (i32, i32, i32) {
    %c0_i32 = arith.constant 0 : i32
    return %arg0, %arg1, %arg2 : i32, i32, i32
  }
  func.func @transform_4(%arg0: i32, %arg1: i32, %arg2: i32) -> (i32, i32, i32) {
    %c0_i32 = arith.constant 0 : i32
    return %arg0, %arg1, %arg2 : i32, i32, i32
  }
}

module attributes {stable_mosaic.version = 11 : i64} {
  func.func @_matmul_stats_kernel(%arg0: i32, %arg1: i32, %arg2: i32, %arg3: memref<1x128x128xbf16, #tpu.memory_space<vmem>>, %arg4: memref<1x128x128xbf16, #tpu.memory_space<vmem>>, %arg5: memref<1x128x128xbf16, #tpu.memory_space<vmem>>, %arg6: memref<1x1x128xf32, #tpu.memory_space<vmem>>, %arg7: memref<1x1x128xf32, #tpu.memory_space<vmem>>) attributes {dimension_semantics = [#tpu.dimension_semantics<parallel>, #tpu.dimension_semantics<parallel>, #tpu.dimension_semantics<parallel>], iteration_bounds = array<i64: 4, 1, 1>, scalar_prefetch = 0 : i64, scratch_operands = 0 : i64, tpu.core_type = #tpu.core_type<tc>, window_params = [{transform_indices = @transform_0, window_bounds = array<i64: 1, 128, 128>}, {transform_indices = @transform_1, window_bounds = array<i64: 1, 128, 128>}, {transform_indices = @transform_2, window_bounds = array<i64: 1, 128, 128>}, {transform_indices = @transform_3, window_bounds = array<i64: 1, 1, 128>}, {transform_indices = @transform_4, window_bounds = array<i64: 1, 1, 128>}]} {
    %c0 = arith.constant 0 : index
    %c0_0 = arith.constant 0 : index
    %c0_1 = arith.constant 0 : index
    %0 = vector.load %arg3[%c0, %c0_0, %c0_1] : memref<1x128x128xbf16, #tpu.memory_space<vmem>>, vector<1x128x128xbf16>
    %1 = vector.shape_cast %0 : vector<1x128x128xbf16> to vector<128x128xbf16>
    %c0_2 = arith.constant 0 : index
    %c0_3 = arith.constant 0 : index
    %c0_4 = arith.constant 0 : index
    %2 = vector.load %arg4[%c0_2, %c0_3, %c0_4] : memref<1x128x128xbf16, #tpu.memory_space<vmem>>, vector<1x128x128xbf16>
    %3 = vector.shape_cast %2 : vector<1x128x128xbf16> to vector<128x128xbf16>
    %cst = arith.constant dense<0.000000e+00> : vector<128x128xf32>
    %4 = tpu.matmul %1, %3, %cst {dimension_numbers = #tpu.dot_dimension_numbers<[1], [0], [0], [1], [0, 0, 1, 1], [], []>} : vector<128x128xbf16>, vector<128x128xbf16>, vector<128x128xf32> -> vector<128x128xf32>
    %5 = arith.truncf %4 : vector<128x128xf32> to vector<128x128xbf16>
    %c0_5 = arith.constant 0 : index
    %c0_6 = arith.constant 0 : index
    %c0_7 = arith.constant 0 : index
    %6 = vector.load %arg5[%c0_5, %c0_6, %c0_7] : memref<1x128x128xbf16, #tpu.memory_space<vmem>>, vector<1x128x128xbf16>
    %7 = vector.shape_cast %6 : vector<1x128x128xbf16> to vector<128x128xbf16>
    %8 = vector.shape_cast %5 : vector<128x128xbf16> to vector<1x128x128xbf16>
    tpu.vector_store %arg5[%c0_5, %c0_6, %c0_7], %8 {strides = array<i32>} : memref<1x128x128xbf16, #tpu.memory_space<vmem>>, vector<1x128x128xbf16>,
    %cst_8 = arith.constant dense<0.000000e+00> : vector<128xf32>
    %9 = vector.multi_reduction <add>, %4, %cst_8 [0] : vector<128x128xf32> to vector<128xf32>
    %10 = vector.shape_cast %9 : vector<128xf32> to vector<1x128xf32>
    %c0_9 = arith.constant 0 : index
    %c0_10 = arith.constant 0 : index
    %c0_11 = arith.constant 0 : index
    %11 = vector.load %arg6[%c0_9, %c0_10, %c0_11] : memref<1x1x128xf32, #tpu.memory_space<vmem>>, vector<1x1x128xf32>
    %12 = vector.shape_cast %11 : vector<1x1x128xf32> to vector<1x128xf32>
    %13 = vector.shape_cast %10 : vector<1x128xf32> to vector<1x1x128xf32>
    tpu.vector_store %arg6[%c0_9, %c0_10, %c0_11], %13 {strides = array<i32>} : memref<1x1x128xf32, #tpu.memory_space<vmem>>, vector<1x1x128xf32>,
    %14 = arith.mulf %4, %4 : vector<128x128xf32>
    %cst_12 = arith.constant dense<0.000000e+00> : vector<128xf32>
    %15 = vector.multi_reduction <add>, %14, %cst_12 [0] : vector<128x128xf32> to vector<128xf32>
    %16 = vector.shape_cast %15 : vector<128xf32> to vector<1x128xf32>
    %c0_13 = arith.constant 0 : index
    %c0_14 = arith.constant 0 : index
    %c0_15 = arith.constant 0 : index
    %17 = vector.load %arg7[%c0_13, %c0_14, %c0_15] : memref<1x1x128xf32, #tpu.memory_space<vmem>>, vector<1x1x128xf32>
    %18 = vector.shape_cast %17 : vector<1x1x128xf32> to vector<1x128xf32>
    %19 = vector.shape_cast %16 : vector<1x128xf32> to vector<1x1x128xf32>
    tpu.vector_store %arg7[%c0_13, %c0_14, %c0_15], %19 {strides = array<i32>} : memref<1x1x128xf32, #tpu.memory_space<vmem>>, vector<1x1x128xf32>,
    return
  }
  func.func @transform_0(%arg0: i32, %arg1: i32, %arg2: i32) -> (i32, i32, i32) {
    %c0_i32 = arith.constant 0 : i32
    %c0_i32_0 = arith.constant 0 : i32
    return %arg0, %arg1, %c0_i32 : i32, i32, i32
  }
  func.func @transform_1(%arg0: i32, %arg1: i32, %arg2: i32) -> (i32, i32, i32) {
    %c0_i32 = arith.constant 0 : i32
    %c0_i32_0 = arith.constant 0 : i32
    return %arg0, %c0_i32, %arg2 : i32, i32, i32
  }
  func.func @transform_2(%arg0: i32, %arg1: i32, %arg2: i32) -> (i32, i32, i32) {
    %c0_i32 = arith.constant 0 : i32
    return %arg0, %arg1, %arg2 : i32, i32, i32
  }
  func.func @transform_3(%arg0: i32, %arg1: i32, %arg2: i32) -> (i32, i32, i32) {
    %c0_i32 = arith.constant 0 : i32
    return %arg0, %arg1, %arg2 : i32, i32, i32
  }
  func.func @transform_4(%arg0: i32, %arg1: i32, %arg2: i32) -> (i32, i32, i32) {
    %c0_i32 = arith.constant 0 : i32
    return %arg0, %arg1, %arg2 : i32, i32, i32
  }
}

module attributes {stable_mosaic.version = 11 : i64} {
  func.func @_matmul_stats_kernel(%arg0: i32, %arg1: i32, %arg2: i32, %arg3: memref<1x512x64xbf16, #tpu.memory_space<vmem>>, %arg4: memref<1x64x128xbf16, #tpu.memory_space<vmem>>, %arg5: memref<1x512x128xbf16, #tpu.memory_space<vmem>>, %arg6: memref<1x1x128xf32, #tpu.memory_space<vmem>>, %arg7: memref<1x1x128xf32, #tpu.memory_space<vmem>>) attributes {dimension_semantics = [#tpu.dimension_semantics<parallel>, #tpu.dimension_semantics<parallel>, #tpu.dimension_semantics<parallel>], iteration_bounds = array<i64: 4, 1, 1>, scalar_prefetch = 0 : i64, scratch_operands = 0 : i64, tpu.core_type = #tpu.core_type<tc>, window_params = [{transform_indices = @transform_0, window_bounds = array<i64: 1, 512, 64>}, {transform_indices = @transform_1, window_bounds = array<i64: 1, 64, 128>}, {transform_indices = @transform_2, window_bounds = array<i64: 1, 512, 128>}, {transform_indices = @transform_3, window_bounds = array<i64: 1, 1, 128>}, {transform_indices = @transform_4, window_bounds = array<i64: 1, 1, 128>}]} {
    %c0 = arith.constant 0 : index
    %c0_0 = arith.constant 0 : index
    %c0_1 = arith.constant 0 : index
    %0 = vector.load %arg3[%c0, %c0_0, %c0_1] : memref<1x512x64xbf16, #tpu.memory_space<vmem>>, vector<1x512x64xbf16>
    %1 = vector.shape_cast %0 : vector<1x512x64xbf16> to vector<512x64xbf16>
    %c0_2 = arith.constant 0 : index
    %c0_3 = arith.constant 0 : index
    %c0_4 = arith.constant 0 : index
    %2 = vector.load %arg4[%c0_2, %c0_3, %c0_4] : memref<1x64x128xbf16, #tpu.memory_space<vmem>>, vector<1x64x128xbf16>
    %3 = vector.shape_cast %2 : vector<1x64x128xbf16> to vector<64x128xbf16>
    %cst = arith.constant dense<0.000000e+00> : vector<512x128xf32>
    %4 = tpu.matmul %1, %3, %cst {dimension_numbers = #tpu.dot_dimension_numbers<[1], [0], [0], [1], [0, 0, 1, 1], [], []>} : vector<512x64xbf16>, vector<64x128xbf16>, vector<512x128xf32> -> vector<512x128xf32>
    %5 = arith.truncf %4 : vector<512x128xf32> to vector<512x128xbf16>
    %c0_5 = arith.constant 0 : index
    %c0_6 = arith.constant 0 : index
    %c0_7 = arith.constant 0 : index
    %6 = vector.load %arg5[%c0_5, %c0_6, %c0_7] : memref<1x512x128xbf16, #tpu.memory_space<vmem>>, vector<1x512x128xbf16>
    %7 = vector.shape_cast %6 : vector<1x512x128xbf16> to vector<512x128xbf16>
    %8 = vector.shape_cast %5 : vector<512x128xbf16> to vector<1x512x128xbf16>
    tpu.vector_store %arg5[%c0_5, %c0_6, %c0_7], %8 {strides = array<i32>} : memref<1x512x128xbf16, #tpu.memory_space<vmem>>, vector<1x512x128xbf16>,
    %cst_8 = arith.constant dense<0.000000e+00> : vector<128xf32>
    %9 = vector.multi_reduction <add>, %4, %cst_8 [0] : vector<512x128xf32> to vector<128xf32>
    %10 = vector.shape_cast %9 : vector<128xf32> to vector<1x128xf32>
    %c0_9 = arith.constant 0 : index
    %c0_10 = arith.constant 0 : index
    %c0_11 = arith.constant 0 : index
    %11 = vector.load %arg6[%c0_9, %c0_10, %c0_11] : memref<1x1x128xf32, #tpu.memory_space<vmem>>, vector<1x1x128xf32>
    %12 = vector.shape_cast %11 : vector<1x1x128xf32> to vector<1x128xf32>
    %13 = vector.shape_cast %10 : vector<1x128xf32> to vector<1x1x128xf32>
    tpu.vector_store %arg6[%c0_9, %c0_10, %c0_11], %13 {strides = array<i32>} : memref<1x1x128xf32, #tpu.memory_space<vmem>>, vector<1x1x128xf32>,
    %14 = arith.mulf %4, %4 : vector<512x128xf32>
    %cst_12 = arith.constant dense<0.000000e+00> : vector<128xf32>
    %15 = vector.multi_reduction <add>, %14, %cst_12 [0] : vector<512x128xf32> to vector<128xf32>
    %16 = vector.shape_cast %15 : vector<128xf32> to vector<1x128xf32>
    %c0_13 = arith.constant 0 : index
    %c0_14 = arith.constant 0 : index
    %c0_15 = arith.constant 0 : index
    %17 = vector.load %arg7[%c0_13, %c0_14, %c0_15] : memref<1x1x128xf32, #tpu.memory_space<vmem>>, vector<1x1x128xf32>
    %18 = vector.shape_cast %17 : vector<1x1x128xf32> to vector<1x128xf32>
    %19 = vector.shape_cast %16 : vector<1x128xf32> to vector<1x1x128xf32>
    tpu.vector_store %arg7[%c0_13, %c0_14, %c0_15], %19 {strides = array<i32>} : memref<1x1x128xf32, #tpu.memory_space<vmem>>, vector<1x1x128xf32>,
    return
  }
  func.func @transform_0(%arg0: i32, %arg1: i32, %arg2: i32) -> (i32, i32, i32) {
    %c0_i32 = arith.constant 0 : i32
    %c0_i32_0 = arith.constant 0 : i32
    return %arg0, %arg1, %c0_i32 : i32, i32, i32
  }
  func.func @transform_1(%arg0: i32, %arg1: i32, %arg2: i32) -> (i32, i32, i32) {
    %c0_i32 = arith.constant 0 : i32
    %c0_i32_0 = arith.constant 0 : i32
    return %arg0, %c0_i32, %arg2 : i32, i32, i32
  }
  func.func @transform_2(%arg0: i32, %arg1: i32, %arg2: i32) -> (i32, i32, i32) {
    %c0_i32 = arith.constant 0 : i32
    return %arg0, %arg1, %arg2 : i32, i32, i32
  }
  func.func @transform_3(%arg0: i32, %arg1: i32, %arg2: i32) -> (i32, i32, i32) {
    %c0_i32 = arith.constant 0 : i32
    return %arg0, %arg1, %arg2 : i32, i32, i32
  }
  func.func @transform_4(%arg0: i32, %arg1: i32, %arg2: i32) -> (i32, i32, i32) {
    %c0_i32 = arith.constant 0 : i32
    return %arg0, %arg1, %arg2 : i32, i32, i32
  }
}

module attributes {stable_mosaic.version = 11 : i64} {
  func.func @_matmul_kernel(%arg0: i32, %arg1: i32, %arg2: i32, %arg3: memref<1x512x32xbf16, #tpu.memory_space<vmem>>, %arg4: memref<1x32x128xbf16, #tpu.memory_space<vmem>>, %arg5: memref<1x512x128xbf16, #tpu.memory_space<vmem>>) attributes {dimension_semantics = [#tpu.dimension_semantics<parallel>, #tpu.dimension_semantics<parallel>, #tpu.dimension_semantics<parallel>], iteration_bounds = array<i64: 4, 4, 1>, scalar_prefetch = 0 : i64, scratch_operands = 0 : i64, tpu.core_type = #tpu.core_type<tc>, window_params = [{transform_indices = @transform_0, window_bounds = array<i64: 1, 512, 32>}, {transform_indices = @transform_1, window_bounds = array<i64: 1, 32, 128>}, {transform_indices = @transform_2, window_bounds = array<i64: 1, 512, 128>}]} {
    %c0 = arith.constant 0 : index
    %c0_0 = arith.constant 0 : index
    %c0_1 = arith.constant 0 : index
    %0 = vector.load %arg3[%c0, %c0_0, %c0_1] : memref<1x512x32xbf16, #tpu.memory_space<vmem>>, vector<1x512x32xbf16>
    %1 = vector.shape_cast %0 : vector<1x512x32xbf16> to vector<512x32xbf16>
    %c0_2 = arith.constant 0 : index
    %c0_3 = arith.constant 0 : index
    %c0_4 = arith.constant 0 : index
    %2 = vector.load %arg4[%c0_2, %c0_3, %c0_4] : memref<1x32x128xbf16, #tpu.memory_space<vmem>>, vector<1x32x128xbf16>
    %3 = vector.shape_cast %2 : vector<1x32x128xbf16> to vector<32x128xbf16>
    %cst = arith.constant dense<0.000000e+00> : vector<512x128xf32>
    %4 = tpu.matmul %1, %3, %cst {dimension_numbers = #tpu.dot_dimension_numbers<[1], [0], [0], [1], [0, 0, 1, 1], [], []>} : vector<512x32xbf16>, vector<32x128xbf16>, vector<512x128xf32> -> vector<512x128xf32>
    %5 = arith.truncf %4 : vector<512x128xf32> to vector<512x128xbf16>
    %c0_5 = arith.constant 0 : index
    %c0_6 = arith.constant 0 : index
    %c0_7 = arith.constant 0 : index
    %6 = vector.load %arg5[%c0_5, %c0_6, %c0_7] : memref<1x512x128xbf16, #tpu.memory_space<vmem>>, vector<1x512x128xbf16>
    %7 = vector.shape_cast %6 : vector<1x512x128xbf16> to vector<512x128xbf16>
    %8 = vector.shape_cast %5 : vector<512x128xbf16> to vector<1x512x128xbf16>
    tpu.vector_store %arg5[%c0_5, %c0_6, %c0_7], %8 {strides = array<i32>} : memref<1x512x128xbf16, #tpu.memory_space<vmem>>, vector<1x512x128xbf16>,
    return
  }
  func.func @transform_0(%arg0: i32, %arg1: i32, %arg2: i32) -> (i32, i32, i32) {
    %c0_i32 = arith.constant 0 : i32
    %c0_i32_0 = arith.constant 0 : i32
    return %arg0, %arg1, %c0_i32 : i32, i32, i32
  }
  func.func @transform_1(%arg0: i32, %arg1: i32, %arg2: i32) -> (i32, i32, i32) {
    %c0_i32 = arith.constant 0 : i32
    %c0_i32_0 = arith.constant 0 : i32
    return %arg0, %c0_i32, %arg2 : i32, i32, i32
  }
  func.func @transform_2(%arg0: i32, %arg1: i32, %arg2: i32) -> (i32, i32, i32) {
    %c0_i32 = arith.constant 0 : i32
    return %arg0, %arg1, %arg2 : i32, i32, i32
  }
}

</mosaic_0001>

<bundles_post_ra>
// kernel: generator_forward.5
= control target key start
LH: loop header
LB: loop body
LE: loop exit
PB: predicated region body
PF: predicated region fallthrough
CT: control target
= control target key end

     0   :  { %10 = vsyncpa [#allocation3], 0  ;;  %s1259_s0 = inlined_call_operand.vmem [shape: bf16[1,16,16], index: 0, kind: input, shape index: {}]   ;;  %s1260_s1 = inlined_call_operand.hbm [shape: bf16[1,16,1024], index: 1, kind: input, shape index: {}]   ;;  %s1261_s2 = inlined_call_operand.vmem [shape: bf16[1,16,1024], index: 2, kind: output, shape index: {0}]   ;;  %s1262_s3 = inlined_call_operand.vmem [shape: f32[1,1,1024], index: 3, kind: output, shape index: {1}]   ;;  %s1263_s4 = inlined_call_operand.vmem [shape: f32[1,1,1024], index: 4, kind: output, shape index: {2}]  }
   0x1   :  { %12 = vsyncpa [#allocation3 + $0x1], 0  ;;  %s1094_s15 = smov 0   ;;  %s1096_s16 = smov 0  }
   0x2   :  { %s1098_s17 = smov 0   ;;  %s1100_s18 = smov 0  }
   0x3   :  { %s1102_s19 = smov 0   ;;  %s1104_s20 = smov 0  }
   0x4 LB: > { %s879_s21 = sadd.s32 4294967295, %s1061_s20   ;;  %s30_s22 = sadd.s32 1, %s1057_s19  ;;  %s1061_s20 = sphi %s1104_s20, %s18_s20   ;;  %s1057_s19 = sphi %s1102_s19, %s1274_s19   ;;  %s1053_s18 = sphi %s1100_s18, %s1273_s18   ;;  %s1049_s17 = sphi %s1098_s17, %s1272_s17   ;;  %s1045_s16 = sphi %s1096_s16, %s1271_s16   ;;  %s1041_s15 = sphi %s1094_s15, %s1270_s15  }
   0x5   : > { %p31_p0 = scmp.ge.s32.totalorder %s30_s22, 2  ;;  %s74_s23 = sadd.s32 1, %s1049_s17 }
   0x6   : > { %p81_p1 = scmp.ne.s32.totalorder %s1049_s17, %s1045_s16  ;;  %p82_p2 = scmp.eq.s32.totalorder %s1061_s20, 0 }
   0x7   : > { %s1276_s22 = smov (%p31_p0, %s30_s22), 0  ;;  %p87_p4 = scmp.ne.s32.totalorder %s1045_s16, %s1041_s15 }
   0x8   : > { %p1130_p3 = por %p82_p2, %p81_p1  ;;  %s70_s25 = ssub.s32 %s1057_s19, %s1276_s22 }
   0x9   : > { %p88_p5 = scmp.eq.s32.totalorder %s879_s21, 0  ;;  %p72_p6 = scmp.eq.s32.totalorder %s70_s25, 0 }
   0xa   : > { %p115_p7 = scmp.eq.s32.totalorder %s879_s21, 1  ;;  %p920_p10 = scmp.lt.s32.totalorder %s1061_s20, 2 }
   0xb   : > { %p1137_p8 = por %p88_p5, %p87_p4  ;;  %s214_s29 = sand.u32 1, %s1049_s17  }
   0xc   : > { %s1142_s27 = scalar_select %p72_p6, %s1049_s17, %s74_s23  }
   0xd   : > { %p1144_p9 = por %p115_p7, %p81_p1  ;;  %s908_s30 = sshll.u32 %s1057_s19, 8 }
   0xe   : > { %s884_s5 = sshll.u32 %s214_s29, 5  ;;  %s1154_s8 = scalar_lea.hbm %s1260_s1, %s908_s30 }
   0xf   : > { %s1266_s28 = scalar_select %p1144_p9, 1, 0 }
  0x10   : > { %s218_s9 = scalar_lea.vmem [#allocation2], %s884_s5  ;;  %p1158_p11 = pnand %p920_p10, %p1130_p3 }
  0x11   : > { %s227_s10 = sshll.u32 %s218_s9, 4  ;;  %s1165_s12 = scalar_lea.sflag [#allocation3], %s214_s29  ;;  %s1162_s10 = int_to_ptr.vmem [resolvable:$true] %s227_s10 }
  0x12   : > { %s981_s13 = scalar_lea.hbm %s1154_s8, 512  ;;  %p983_p0 = pneg %p1158_p11 }
  0x13   : > { %p982_p13 = scmp.ne.s32.totalorder %s1154_s8, %s981_s13  ;;  %s986_s21 = scalar_lea.hbm %s1260_s1, 1024 }
  0x14   : > { %p987_p3 = scmp.lt.u32.totalorder %s1154_s8, %s1260_s1  ;;  %p988_p4 = scmp.lt.u32.totalorder %s986_s21, %s981_s13 }
  0x15   : > { %p984_p1 = pnand %p983_p0, %p982_p13  ;;  %p990_p6 = scmp.lt.u32.totalorder %s981_s13, %s1154_s8 }
  0x16   : > { %p989_p5 = por %p988_p4, %p987_p3 }
  0x17   : > { %p985_p2 = pneg %p984_p1 }
  0x18   : > { %p991_p7 = por %p990_p6, %p989_p5 }
  0x1a   : > { %p992_p10 = pnand %p991_p7, %p985_p2 }
  0x1c   : > { %995 = shalt.err (!%p992_p10)
}
  0x1d   : > { %s996_s25 = scalar_lea.vmem %s1162_s10, 512  ;;  %s1063_s29 = smov [#allocation2]  }
  0x1e   : > { %p997_p13 = scmp.ne.s32.totalorder %s1162_s10, %s996_s25  ;;  %s1001_s30 = sshll.u32 %s1063_s29, 4  ;;  %s1002_s30 = int_to_ptr.vmem [resolvable:$false] %s1001_s30 }
  0x1f   : > { %s1003_s5 = scalar_lea.vmem %s1002_s30, 1024  ;;  %p1004_p9 = scmp.lt.s32.totalorder %s1162_s10, %s1002_s30 }
  0x20   : > { %p999_p1 = pnand %p997_p13, %p983_p0  ;;  %p1005_p3 = scmp.lt.s32.totalorder %s1003_s5, %s996_s25 }
  0x22   : > { %p1000_p12 = pneg %p999_p1  ;;  %p1006_p4 = por %p1005_p3, %p1004_p9 }
  0x24   : > { %p1007_p5 = pnand %p1006_p4, %p1000_p12 }
  0x26   : > { %1010 = shalt.err (!%p1007_p5)
}
  0x27   : > { %s1064_s6 = smov 512   ;;  %s1065_s7 = smov 256  }
  0x28   : > { %s1066_s9 = smov 16   ;;  %p235_p0 = scmp.lt.s32.totalorder %s1061_s20, 3 }
  0x29   : > { %919 = dma.hbm_to_vmem [thread:$0]  (!%p1158_p11), %s1154_s8, 512, %s1162_s10, %s1165_s12, %s1064_s6, %s1065_s7, %s1066_s9  }
  0x2a   : > { %p1268_p2 = scmp.ge.s32.totalorder %s1061_s20, 1 }
  0x2c   : > { %p236_p6 = pnand %p1268_p2, %p235_p0 }
  0x2d   : > { %s241_s13 = sand.u32 (!%p236_p6), 1, %s1045_s16  }
  0x2e   : > { %239 = sbr.rel (%p236_p6) target bundleno = 303 (0x12f), region = 28  ;;  %s1197_s14 = sshll.u32 (!%p236_p6), %s241_s13, 5 }
  0x2f   : > { %s242_s15 = scalar_lea.sflag (!%p236_p6), [#allocation3], %s241_s13  ;;  %s245_s21 = scalar_lea.vmem (!%p236_p6), [#allocation2], %s1197_s14 }
  0x35   : > { %1036 = dma.done.wait (%p1137_p8), %s242_s15, 512  }
  0x36   : > { %1038 = vsyncadd (%p1137_p8), %s242_s15, 4294966784  ;;  %v1067_v0 = vmov 0   ;;  %v974_v1 = vld [vmem:[%s245_s21 + $0x4] ss:$16 sps:$4 sm:$0xff]   ;;  %v976_v2 = vld [vmem:[%s245_s21 + $0xc] ss:$16 sps:$4 sm:$0xff]   ;;  %v528_v8 = vlaneseq }
  0x37   : > { %409 = vmatprep.mubr.bf16.mxu0 %v1067_v0  ;;  %452 = vmatprep.mubr.bf16.mxu1 %v1067_v0  ;;  %v978_v3 = vld [vmem:[%s245_s21] ss:$16 sps:$4 sm:$0xff]   ;;  %v979_v4 = vld [vmem:[%s245_s21 + $0x8] ss:$16 sps:$4 sm:$0xff]   ;;  %vm373_vm0 = vcmask 130048   ;;  %s1211_s26 = scalar_lea.vmem [#allocation4], %s1197_s14 }
  0x38   : > { %377 = vmatprep.subr.bf16.mxu0 %v974_v1  ;;  %420 = vmatprep.subr.bf16.mxu1 %v976_v2  ;;  %v980_v5 = vld [vmem:[%s1259_s0] sm:$0xff]   ;;  %v1068_v6 = vmov 1966171168   ;;  %v529_v10 = vshrl.u32 %v528_v8, 7  ;;  %s890_s11 = sshll.u32 %s1053_s18, 2  ;;  %vm550_vm1 = vcmp.lt.s32.totalorder %v528_v8, 512 }
  0x39   : > { %378 = vmatpush1.bf16.msra.mxu0 %v978_v3  ;;  %421 = vmatpush1.bf16.msra.mxu1 %v979_v4  ;;  %v526_v7 = vunpack.c.l.s4 %v1068_v6  ;;  %p320_p8 = scmp.lt.s32.totalorder %s890_s11, 7  ;;  %p1269_p9 = scmp.ne.s32.totalorder %s1266_s28, 0 }
  0x3a   : > { %s913_s5 = sshll.u32 (%p1269_p9), %s1053_s18, 4 }
  0x3b   : > { %v527_v9 = vunpack.c.0.s8 %v526_v7  ;;  %s1278_s11 = smov (!%p320_p8, %s890_s11), 7  ;;  %s657_s9 = scalar_lea.vmem (%p1269_p9), %s1261_s2, %s913_s5 }
  0x3c   : > { %897 = vmatmul.mubr.msk.bf16.vlgmr.msra.gmra.mrb[0].mxu0 %vm373_vm0, %v980_v5  ;;  %898 = vmatmul.mubr.msk.bf16.vlgmr.msra.gmra.mrb[0].mxu1 %vm373_vm0, %v980_v5  ;;  %s326_s24 = scalar_lea.vmem %s1262_s3, %s1278_s11  ;;  %s339_s30 = scalar_lea.vmem %s1263_s4, %s1278_s11 }
  0x3d   : > { %v1208_v17 = vsub.s32 %v527_v9, %v529_v10 }
 0x10f   : > { %v411_v11 = vpop.f32.mrb[0].mxu0  ;;  %v454_v12 = vpop.f32.mrb[0].mxu1 }
 0x110   : > { %v553_v13 = vmul.f32 %v411_v11, %v411_v11  ;;  %v555_v14 = vmul.f32 %v454_v12, %v454_v12  ;;  %v413_v15 = vpop.f32.mrb[1].mxu0  ;;  %v456_v16 = vpop.f32.mrb[1].mxu1 }
 0x111   : > { %v909_v18 = vpack.c.bf16 %v413_v15, %v411_v11  ;;  %v554_v19 = vmul.f32 %v413_v15, %v413_v15  ;;  %v910_v20 = vpack.c.bf16 %v456_v16, %v454_v12  ;;  %v556_v21 = vmul.f32 %v456_v16, %v456_v16  ;;  %v415_v22 = vpop.f32.mrb[2].mxu0  ;;  %v458_v23 = vpop.f32.mrb[2].mxu1 }
 0x112   : > { %v491_v24 = vadd.f32 %v415_v22, %v411_v11  ;;  %v557_v25 = vmul.f32 %v415_v22, %v415_v22  ;;  %v505_v26 = vadd.f32 %v458_v23, %v454_v12  ;;  %v559_v27 = vmul.f32 %v458_v23, %v458_v23  ;;  %v417_v28 = vpop.f32.mrb[3].mxu0  ;;  %v460_v29 = vpop.f32.mrb[3].mxu1 }
 0x113   : > { %487 = vst [vmem:[%s1211_s26] sm:$0xff] %v909_v18  ;;  %488 = vst [vmem:[%s1211_s26 + $0x8] sm:$0xff] %v910_v20  ;;  %v911_v30 = vpack.c.bf16 %v417_v28, %v415_v22  ;;  %v498_v31 = vadd.f32 %v417_v28, %v413_v15  ;;  %v558_v32 = vmul.f32 %v417_v28, %v417_v28 }
 0x114   : > { %v912_v33 = vpack.c.bf16 %v460_v29, %v458_v23  ;;  %v492_v34 = vrot.slane %v491_v24, 4  ;;  %v561_v35 = vadd.f32 %v557_v25, %v553_v13  ;;  %v506_v36 = vrot.slane %v505_v26, 4 }
 0x115   : > { %v575_v37 = vadd.f32 %v559_v27, %v555_v14  ;;  %489 = vst [vmem:[%s1211_s26 + $0x10] sm:$0xff] %v911_v30  ;;  %v499_v38 = vrot.slane %v498_v31, 4  ;;  %v568_v39 = vadd.f32 %v558_v32, %v554_v19  ;;  %v512_v40 = vadd.f32 %v460_v29, %v456_v16 }
 0x116   : > { %490 = vst [vmem:[%s1211_s26 + $0x18] sm:$0xff] %v912_v33  ;;  %v560_v41 = vmul.f32 %v460_v29, %v460_v29  ;;  %v493_v42 = vadd.f32 %v492_v34, %v491_v24  ;;  %v562_v43 = vrot.slane %v561_v35, 4  ;;  %v507_v44 = vadd.f32 %v506_v36, %v505_v26 }
 0x117   : > { %v576_v45 = vrot.slane %v575_v37, 4  ;;  %v500_v46 = vadd.f32 %v499_v38, %v498_v31  ;;  %v569_v47 = vrot.slane %v568_v39, 4  ;;  %v513_v48 = vrot.slane %v512_v40, 4 }
 0x118   : > { %v582_v49 = vadd.f32 %v560_v41, %v556_v21  ;;  %v494_v50 = vrot.slane %v493_v42, 2  ;;  %v563_v51 = vadd.f32 %v562_v43, %v561_v35  ;;  %v508_v52 = vrot.slane %v507_v44, 2 }
 0x119   : > { %v577_v53 = vadd.f32 %v576_v45, %v575_v37  ;;  %v501_v54 = vrot.slane %v500_v46, 2  ;;  %v570_v55 = vadd.f32 %v569_v47, %v568_v39  ;;  %v514_v56 = vadd.f32 %v513_v48, %v512_v40 }
 0x11a   : > { %v583_v57 = vrot.slane %v582_v49, 4  ;;  %v495_v58 = vadd.f32 %v494_v50, %v493_v42  ;;  %v564_v59 = vrot.slane %v563_v51, 2  ;;  %v509_v60 = vadd.f32 %v508_v52, %v507_v44  ;;  %v670_v8 = vld [vmem:[%s1211_s26] sm:$0xff] (%p1269_p9)  ;;  %v672_v38 = vld [vmem:[%s1211_s26 + $0x8] sm:$0xff] (%p1269_p9) }
 0x11b   : > { %v578_v61 = vrot.slane %v577_v53, 2  ;;  %v502_v62 = vadd.f32 %v501_v54, %v500_v46  ;;  %v571_v63 = vrot.slane %v570_v55, 2  ;;  %v515_v0 = vrot.slane %v514_v56, 2  ;;  %671 = vst [vmem:[%s657_s9] sm:$0xff] (%p1269_p9), %v670_v8  ;;  %673 = vst [vmem:[%s657_s9 + $0x8] sm:$0xff] (%p1269_p9), %v672_v38 }
 0x11c   : > { %v584_v1 = vadd.f32 %v583_v57, %v582_v49  ;;  %v496_v2 = vrot.slane %v495_v58, 1  ;;  %v565_v3 = vadd.f32 %v564_v59, %v563_v51  ;;  %v510_v4 = vrot.slane %v509_v60, 1  ;;  %v674_v39 = vld [vmem:[%s1211_s26 + $0x10] sm:$0xff] (%p1269_p9) }
 0x11d   : > { %v579_v5 = vadd.f32 %v578_v61, %v577_v53  ;;  %v503_v6 = vrot.slane %v502_v62, 1  ;;  %v572_v7 = vadd.f32 %v571_v63, %v570_v55  ;;  %v516_v9 = vadd.f32 %v515_v0, %v514_v56  ;;  %v676_v40 = vld [vmem:[%s1211_s26 + $0x18] sm:$0xff] (%p1269_p9)  ;;  %675 = vst [vmem:[%s657_s9 + $0x20] sm:$0xff] (%p1269_p9), %v674_v39 }
 0x11e   : > { %v585_v10 = vrot.slane %v584_v1, 2  ;;  %v497_v11 = vadd.f32 %v496_v2, %v495_v58  ;;  %v566_v12 = vrot.slane %v565_v3, 1  ;;  %v511_v13 = vadd.f32 %v510_v4, %v509_v60  ;;  %677 = vst [vmem:[%s657_s9 + $0x28] sm:$0xff] (%p1269_p9), %v676_v40 }
 0x11f   : > { %v580_v14 = vrot.slane %v579_v5, 1  ;;  %v504_v15 = vadd.f32 %v503_v6, %v502_v62  ;;  %v573_v16 = vrot.slane %v572_v7, 1  ;;  %v517_v18 = vrot.slane %v516_v9, 1 }
 0x120   : > { %v586_v19 = vadd.f32 %v585_v10, %v584_v1  ;;  %v567_v20 = vadd.f32 %v566_v12, %v565_v3 }
 0x121   : > { %v581_v21 = vadd.f32 %v580_v14, %v579_v5  ;;  %v523_v22 = vcombine.low %v497_v11, %v504_v15  ;;  %v574_v23 = vadd.f32 %v573_v16, %v572_v7  ;;  %v518_v24 = vadd.f32 %v517_v18, %v516_v9 }
 0x122   : > { %v587_v25 = vrot.slane %v586_v19, 1 }
 0x123   : > { %v531_v26 = vrot.slane %v523_v22, %v1208_v17  ;;  %v593_v27 = vcombine.low %v567_v20, %v574_v23  ;;  %v524_v28 = vcombine.low %v511_v13, %v518_v24 }
 0x124   : > { %v588_v29 = vadd.f32 %v587_v25, %v586_v19 }
 0x125   : > { %v601_v30 = vrot.slane %v593_v27, %v1208_v17  ;;  %v538_v31 = vrot.slane %v524_v28, %v1208_v17 }
 0x126   : > { %v594_v32 = vcombine.low %v581_v21, %v588_v29 }
 0x127   : > { %v539_v33 = vcombine.low %v531_v26, %v538_v31 }
 0x128   : > { %v608_v34 = vrot.slane %v594_v32, %v1208_v17  ;;  %649 = sbr.rel (!%p1269_p9) target bundleno = 303 (0x12f), region = 36 }
 0x129   : > { %v546_v35 = vrot.slane %v539_v33, %v1208_v17 }
 0x12a   : > { %v609_v36 = vcombine.low %v601_v30, %v608_v34 }
 0x12b   : > { %552 = vst.msk [vmem:[%s326_s24] sm:$0xf] %vm550_vm1, %v546_v35 }
 0x12c   : > { %v616_v37 = vrot.slane %v609_v36, %v1208_v17 }
 0x12e   : > { %618 = vst.msk [vmem:[%s339_s30] sm:$0xf] %vm550_vm1, %v616_v37 }
 0x12f PF: > { %s18_s20 = sadd.s32 1, %s1061_s20   ;;  %s1270_s15 = smov %s1045_s16 }
 0x130   : > { %p15_p11 = scmp.ge.s32.totalorder %s18_s20, 4   ;;  %s1271_s16 = smov %s1049_s17 }
 0x131   : > { %s1272_s17 = smov %s1142_s27  ;;  %s1273_s18 = smov %s1057_s19 }
 0x132   : > { %s1274_s19 = smov %s1276_s22  ;;  %17 = sbr.rel (!%p15_p11) target bundleno = 4 (0x4), region = 118 }
 0x139   :  { %731 = vsyncpa [#allocation3], 1 }
 0x13a   :  { %733 = vsyncpa [#allocation3 + $0x1], 1 }

// kernel: generator_forward.6
= control target key start
LH: loop header
LB: loop body
LE: loop exit
PB: predicated region body
PF: predicated region fallthrough
CT: control target
= control target key end

     0   :  { %10 = vsyncpa [#allocation3], 0  ;;  %s1258_s0 = inlined_call_operand.vmem [shape: bf16[4,32,256], index: 0, kind: input, shape index: {}]   ;;  %s1259_s1 = inlined_call_operand.hbm [shape: bf16[4,256,128], index: 1, kind: input, shape index: {}]   ;;  %s1260_s2 = inlined_call_operand.vmem [shape: bf16[4,32,128], index: 2, kind: output, shape index: {0}]   ;;  %s1261_s3 = inlined_call_operand.vmem [shape: f32[4,1,128], index: 3, kind: output, shape index: {1}]   ;;  %s1262_s4 = inlined_call_operand.vmem [shape: f32[4,1,128], index: 4, kind: output, shape index: {2}]  }
   0x1   :  { %12 = vsyncpa [#allocation3 + $0x1], 0  ;;  %s1101_s15 = smov 0   ;;  %s1103_s16 = smov 0  }
   0x2   :  { %s1105_s17 = smov 0   ;;  %s1107_s18 = smov 0  }
   0x3   :  { %s1109_s19 = smov 0   ;;  %s1111_s20 = smov 0  }
   0x4 LB: > { %s811_s21 = sadd.s32 4294967295, %s1071_s20   ;;  %s37_s22 = sadd.s32 1, %s1067_s19  ;;  %s1071_s20 = sphi %s1111_s20, %s18_s20   ;;  %s1067_s19 = sphi %s1109_s19, %s1270_s19   ;;  %s1063_s18 = sphi %s1107_s18, %s1269_s18   ;;  %s1059_s17 = sphi %s1105_s17, %s1268_s17   ;;  %s1055_s16 = sphi %s1103_s16, %s1267_s16   ;;  %s1051_s15 = sphi %s1101_s15, %s1266_s15  }
   0x5   : > { %p39_p0 = scmp.ge.s32.totalorder %s37_s22, 4  ;;  %s74_s23 = sadd.s32 1, %s1059_s17 }
   0x6   : > { %p81_p1 = scmp.ne.s32.totalorder %s1059_s17, %s1055_s16  ;;  %p82_p2 = scmp.eq.s32.totalorder %s1071_s20, 0 }
   0x7   : > { %s1272_s22 = smov (%p39_p0, %s37_s22), 0  ;;  %p87_p4 = scmp.ne.s32.totalorder %s1055_s16, %s1051_s15 }
   0x8   : > { %p1137_p3 = por %p82_p2, %p81_p1  ;;  %s69_s25 = ssub.s32 %s1067_s19, %s1272_s22 }
   0x9   : > { %p88_p5 = scmp.eq.s32.totalorder %s811_s21, 0  ;;  %p72_p6 = scmp.eq.s32.totalorder %s69_s25, 0 }
   0xa   : > { %p918_p8 = scmp.lt.s32.totalorder %s1071_s20, 4  ;;  %s215_s28 = sand.u32 1, %s1059_s17  }
   0xb   : > { %p1144_p7 = por %p88_p5, %p87_p4  ;;  %s850_s29 = sshll.u32 %s1067_s19, 11 }
   0xc   : > { %s1150_s27 = scalar_select %p72_p6, %s1059_s17, %s74_s23  }
   0xd   : > { %s815_s30 = sshll.u32 %s215_s28, 7  ;;  %s1157_s7 = scalar_lea.hbm %s1259_s1, %s850_s29 }
   0xe   : > { %s219_s8 = scalar_lea.vmem [#allocation2], %s815_s30  ;;  %p1161_p9 = pnand %p918_p8, %p1137_p3 }
   0xf   : > { %s227_s9 = sshll.u32 %s219_s8, 4  ;;  %s1167_s11 = scalar_lea.sflag [#allocation3], %s215_s28  ;;  %s1165_s9 = int_to_ptr.vmem [resolvable:$true] %s227_s9 }
  0x10   : > { %s991_s12 = scalar_lea.hbm %s1157_s7, 2048  ;;  %p993_p11 = pneg %p1161_p9 }
  0x11   : > { %p992_p10 = scmp.ne.s32.totalorder %s1157_s7, %s991_s12  ;;  %s996_s15 = scalar_lea.hbm %s1259_s1, 8192 }
  0x12   : > { %p997_p0 = scmp.lt.u32.totalorder %s1157_s7, %s1259_s1  ;;  %p998_p1 = scmp.lt.u32.totalorder %s996_s15, %s991_s12 }
  0x13   : > { %p994_p12 = pnand %p993_p11, %p992_p10  ;;  %p1000_p3 = scmp.lt.u32.totalorder %s991_s12, %s1157_s7 }
  0x14   : > { %p999_p2 = por %p998_p1, %p997_p0 }
  0x15   : > { %p995_p13 = pneg %p994_p12 }
  0x16   : > { %p1001_p4 = por %p1000_p3, %p999_p2 }
  0x18   : > { %p1002_p5 = pnand %p1001_p4, %p995_p13 }
  0x1a   : > { %1005 = shalt.err (!%p1002_p5)
}
  0x1b   : > { %s1006_s24 = scalar_lea.vmem %s1165_s9, 2048  ;;  %s1073_s25 = smov [#allocation2]  }
  0x1c   : > { %p1007_p6 = scmp.ne.s32.totalorder %s1165_s9, %s1006_s24  ;;  %s1011_s28 = sshll.u32 %s1073_s25, 4  ;;  %s1012_s28 = int_to_ptr.vmem [resolvable:$false] %s1011_s28 }
  0x1d   : > { %s1013_s29 = scalar_lea.vmem %s1012_s28, 4096  ;;  %p1014_p12 = scmp.lt.s32.totalorder %s1165_s9, %s1012_s28 }
  0x1e   : > { %p1009_p8 = pnand %p1007_p6, %p993_p11  ;;  %p1015_p0 = scmp.lt.s32.totalorder %s1013_s29, %s1006_s24 }
  0x20   : > { %p1010_p10 = pneg %p1009_p8  ;;  %p1016_p1 = por %p1015_p0, %p1014_p12 }
  0x22   : > { %p1017_p2 = pnand %p1016_p1, %p1010_p10 }
  0x24   : > { %1020 = shalt.err (!%p1017_p2)
}
  0x25   : > { %s1074_s30 = smov 64   ;;  %s1075_s5 = smov 4  }
  0x26   : > { %917 = dma.hbm_to_vmem [thread:$0]  (!%p1161_p9), %s1157_s7, 2048, %s1165_s9, %s1167_s11, %s1074_s30, %s1074_s30, %s1075_s5  }
  0x27   : > { %p818_p11 = scmp.ge.s32.totalorder %s1071_s20, 1  ;;  %p235_p13 = scmp.lt.s32.totalorder %s1071_s20, 5 }
  0x29   : > { %p236_p3 = pnand %p818_p11, %p235_p13 }
  0x2a   : > { %s241_s6 = sand.u32 (!%p236_p3), 1, %s1055_s16  }
  0x2b   : > { %239 = sbr.rel (%p236_p3) target bundleno = 322 (0x142), region = 28  ;;  %s819_s8 = sshll.u32 (!%p236_p3), %s241_s6, 7 }
  0x2c   : > { %s242_s12 = scalar_lea.sflag (!%p236_p3), [#allocation3], %s241_s6  ;;  %s1198_s13 = scalar_lea.vmem (!%p236_p3), [#allocation2], %s819_s8 }
  0x32   : > { %1046 = dma.done.wait (%p1144_p7), %s242_s12, 2048  }
  0x33   : > { %1048 = vsyncadd (%p1144_p7), %s242_s12, 4294965248  ;;  %v969_v0 = vld [vmem:[%s1198_s13 + $0x40] sm:$0xff]   ;;  %v971_v2 = vld [vmem:[%s1198_s13 + $0x48] sm:$0xff]   ;;  %p306_p9 = scmp.lt.s32.totalorder %s1063_s18, 3 }
  0x34   : > { %v970_v1 = vld [vmem:[%s1198_s13] sm:$0xff]   ;;  %868 = vmatprep.subr.bf16.mxu0 %v969_v0  ;;  %896 = vmatprep.subr.bf16.mxu1 %v969_v0  ;;  %v972_v3 = vld [vmem:[%s1198_s13 + $0x8] sm:$0xff]   ;;  %v973_v4 = vld [vmem:[%s1198_s13 + $0x50] sm:$0xff]  }
  0x35   : > { %869 = vmatpush3.bf16.msra.mxu0 %v970_v1  ;;  %904 = vmatpush3.bf16.msra.mxu1 %v970_v1  ;;  %v974_v5 = vld [vmem:[%s1198_s13 + $0x10] sm:$0xff]   ;;  %s1274_s18 = smov (!%p306_p9, %s1063_s18), 3  ;;  %v975_v6 = vld [vmem:[%s1198_s13 + $0x58] sm:$0xff]   ;;  %v977_v8 = vld [vmem:[%s1198_s13 + $0x60] sm:$0xff]  }
  0x36   : > { %870 = vmatprep.subr.bf16.mxu0 %v971_v2  ;;  %897 = vmatprep.subr.bf16.mxu1 %v971_v2  ;;  %v976_v7 = vld [vmem:[%s1198_s13 + $0x18] sm:$0xff]   ;;  %s851_s26 = sshll.u32 %s1274_s18, 5  ;;  %v978_v9 = vld [vmem:[%s1198_s13 + $0x20] sm:$0xff]   ;;  %v979_v10 = vld [vmem:[%s1198_s13 + $0x68] sm:$0xff]   ;;  %s852_s11 = sshll.u32 %s1274_s18, 4 }
  0x37   : > { %s314_s10 = scalar_lea.vmem %s1258_s0, %s851_s26  ;;  %v980_v13 = vld [vmem:[%s1198_s13 + $0x28] sm:$0xff]   ;;  %v981_v14 = vld [vmem:[%s1198_s13 + $0x70] sm:$0xff]   ;;  %v983_v16 = vld [vmem:[%s1198_s13 + $0x78] sm:$0xff]   ;;  %s327_s21 = scalar_lea.vmem %s1260_s2, %s852_s11 }
  0x38   : > { %v987_v11 = vld [vmem:[%s314_s10 + $0x4] ss:$8 sps:$4 sm:$0xff]   ;;  %v990_v12 = vld [vmem:[%s314_s10 + $0x14] ss:$8 sps:$4 sm:$0xff]   ;;  %v985_v18 = vld [vmem:[%s314_s10] ss:$8 sps:$4 sm:$0xff]   ;;  %s337_s25 = scalar_lea.vmem %s1261_s3, %s1274_s18  ;;  %s346_s30 = scalar_lea.vmem %s1262_s4, %s1274_s18 }
  0x39   : > { %871 = vmatpush3.bf16.msra.mxu0 %v972_v3  ;;  %905 = vmatpush3.bf16.msra.mxu1 %v972_v3  ;;  %v982_v15 = vld [vmem:[%s1198_s13 + $0x30] sm:$0xff]   ;;  %v984_v17 = vld [vmem:[%s1198_s13 + $0x38] sm:$0xff]  }
  0x3a   : > { %872 = vmatprep.subr.bf16.mxu0 %v973_v4  ;;  %898 = vmatprep.subr.bf16.mxu1 %v973_v4  ;;  %v988_v19 = vld [vmem:[%s314_s10 + $0x10] ss:$8 sps:$4 sm:$0xff]  }
  0x3b   : > { %532 = vmatprep.mubr.bf16.mxu0 %v987_v11  ;;  %540 = vmatprep.mubr.bf16.mxu1 %v990_v12 }
  0x3d   : > { %873 = vmatpush3.bf16.msra.mxu0 %v974_v5  ;;  %906 = vmatpush3.bf16.msra.mxu1 %v974_v5 }
  0x3e   : > { %874 = vmatprep.subr.bf16.mxu0 %v975_v6  ;;  %899 = vmatprep.subr.bf16.mxu1 %v975_v6 }
  0x41   : > { %875 = vmatpush3.bf16.msra.mxu0 %v976_v7  ;;  %907 = vmatpush3.bf16.msra.mxu1 %v976_v7 }
  0x42   : > { %876 = vmatprep.subr.bf16.mxu0 %v977_v8  ;;  %900 = vmatprep.subr.bf16.mxu1 %v977_v8 }
  0x45   : > { %877 = vmatpush3.bf16.msra.mxu0 %v978_v9  ;;  %908 = vmatpush3.bf16.msra.mxu1 %v978_v9 }
  0x46   : > { %878 = vmatprep.subr.bf16.mxu0 %v979_v10  ;;  %901 = vmatprep.subr.bf16.mxu1 %v979_v10 }
  0x49   : > { %879 = vmatpush3.bf16.msra.mxu0 %v980_v13  ;;  %909 = vmatpush3.bf16.msra.mxu1 %v980_v13 }
  0x4a   : > { %880 = vmatprep.subr.bf16.mxu0 %v981_v14  ;;  %902 = vmatprep.subr.bf16.mxu1 %v981_v14 }
  0x4d   : > { %881 = vmatpush3.bf16.msra.mxu0 %v982_v15  ;;  %910 = vmatpush3.bf16.msra.mxu1 %v982_v15 }
  0x4e   : > { %882 = vmatprep.subr.bf16.mxu0 %v983_v16  ;;  %903 = vmatprep.subr.bf16.mxu1 %v983_v16 }
  0x51   : > { %883 = vmatpush3.bf16.msra.mxu0 %v984_v17  ;;  %911 = vmatpush3.bf16.msra.mxu1 %v984_v17 }
  0x54   : > { %533 = vmatmul.mubr.bf16.vlgmr.msra.gmra.mrb[0].mxu0 %v985_v18  ;;  %541 = vmatmul.mubr.bf16.vlgmr.msra.gmra.mrb[0].mxu1 %v988_v19 }
 0x127   : > { %v884_v20 = vpop.f32.mrb[0].mxu0  ;;  %v890_v21 = vpop.f32.mrb[0].mxu1 }
 0x128   : > { %v885_v22 = vpop.f32.mrb[1].mxu0  ;;  %v891_v23 = vpop.f32.mrb[1].mxu1 }
 0x129   : > { %v886_v24 = vadd.f32 %v885_v22, %v884_v20  ;;  %v887_v25 = vpop.f32.mrb[2].mxu0  ;;  %v892_v26 = vadd.f32 %v891_v23, %v890_v21  ;;  %v893_v27 = vpop.f32.mrb[2].mxu1 }
 0x12a   : > { %v888_v28 = vpop.f32.mrb[3].mxu0  ;;  %v894_v29 = vpop.f32.mrb[3].mxu1 }
 0x12b   : > { %v889_v30 = vadd.f32 %v888_v28, %v887_v25  ;;  %v895_v31 = vadd.f32 %v894_v29, %v893_v27  ;;  %v579_v32 = vmul.f32 %v886_v24, %v886_v24  ;;  %v581_v33 = vmul.f32 %v892_v26, %v892_v26 }
 0x12d   : > { %v860_v34 = vpack.c.bf16 %v889_v30, %v886_v24  ;;  %v569_v35 = vadd.f32 %v889_v30, %v886_v24  ;;  %v580_v36 = vmul.f32 %v889_v30, %v889_v30  ;;  %v865_v37 = vpack.c.bf16 %v895_v31, %v892_v26 }
 0x12e   : > { %v582_v41 = vmul.f32 %v895_v31, %v895_v31 }
 0x12f   : > { %861 = vst [vmem:[%s327_s21] sm:$0xff] %v860_v34   ;;  %v583_v38 = vadd.f32 %v580_v36, %v579_v32  ;;  %867 = vst [vmem:[%s327_s21 + $0x8] sm:$0xff] %v865_v37   ;;  %v570_v39 = vadd.f32 %v892_v26, %v569_v35 }
 0x131   : > { %v571_v40 = vadd.f32 %v895_v31, %v570_v39  ;;  %v584_v42 = vadd.f32 %v583_v38, %v581_v33 }
 0x133   : > { %v572_v43 = vrot.slane %v571_v40, 4  ;;  %v585_v44 = vadd.f32 %v584_v42, %v582_v41 }
 0x135   : > { %v573_v45 = vadd.f32 %v572_v43, %v571_v40  ;;  %v586_v46 = vrot.slane %v585_v44, 4 }
 0x137   : > { %v574_v47 = vrot.slane %v573_v45, 2  ;;  %v587_v48 = vadd.f32 %v586_v46, %v585_v44 }
 0x139   : > { %v575_v49 = vadd.f32 %v574_v47, %v573_v45  ;;  %v588_v50 = vrot.slane %v587_v48, 2 }
 0x13b   : > { %v576_v51 = vrot.slane %v575_v49, 1  ;;  %v589_v52 = vadd.f32 %v588_v50, %v587_v48 }
 0x13d   : > { %v577_v53 = vadd.f32 %v576_v51, %v575_v49  ;;  %v590_v54 = vrot.slane %v589_v52, 1 }
 0x13f   : > { %578 = vst [vmem:[%s337_s25] sm:$0x1] %v577_v53  ;;  %v591_v55 = vadd.f32 %v590_v54, %v589_v52 }
 0x141   : > { %592 = vst [vmem:[%s346_s30] sm:$0x1] %v591_v55 }
 0x142 PF: > { %s18_s20 = sadd.s32 1, %s1071_s20   ;;  %s1266_s15 = smov %s1055_s16 }
 0x143   : > { %p15_p7 = scmp.ge.s32.totalorder %s18_s20, 6   ;;  %s1267_s16 = smov %s1059_s17 }
 0x144   : > { %s1268_s17 = smov %s1150_s27  ;;  %s1269_s18 = smov %s1067_s19 }
 0x145   : > { %s1270_s19 = smov %s1272_s22  ;;  %17 = sbr.rel (!%p15_p7) target bundleno = 4 (0x4), region = 95 }
 0x14c   :  { %677 = vsyncpa [#allocation3], 1 }
 0x14d   :  { %679 = vsyncpa [#allocation3 + $0x1], 1 }

// kernel: generator_forward.7
= control target key start
LH: loop header
LB: loop body
LE: loop exit
PB: predicated region body
PF: predicated region fallthrough
CT: control target
= control target key end

     0   :  { %10 = vsyncpa [#allocation3], 0  ;;  %s1457_s0 = inlined_call_operand.vmem [shape: bf16[4,128,128], index: 0, kind: input, shape index: {}]   ;;  %s1458_s1 = inlined_call_operand.hbm [shape: bf16[4,128,128], index: 1, kind: input, shape index: {}]   ;;  %s1459_s2 = inlined_call_operand.vmem [shape: bf16[4,128,128], index: 2, kind: output, shape index: {0}]   ;;  %s1460_s3 = inlined_call_operand.vmem [shape: f32[4,1,128], index: 3, kind: output, shape index: {1}]   ;;  %s1461_s4 = inlined_call_operand.vmem [shape: f32[4,1,128], index: 4, kind: output, shape index: {2}]  }
   0x1   :  { %12 = vsyncpa [#allocation3 + $0x1], 0  ;;  %s1285_s15 = smov 0   ;;  %s1287_s16 = smov 0  }
   0x2   :  { %s1289_s17 = smov 0   ;;  %s1291_s18 = smov 0  }
   0x3   :  { %s1293_s19 = smov 0   ;;  %s1295_s20 = smov 0  }
   0x4 LB: > { %s925_s21 = sadd.s32 4294967295, %s1255_s20   ;;  %s37_s22 = sadd.s32 1, %s1251_s19  ;;  %s1255_s20 = sphi %s1295_s20, %s18_s20   ;;  %s1251_s19 = sphi %s1293_s19, %s1469_s19   ;;  %s1247_s18 = sphi %s1291_s18, %s1468_s18   ;;  %s1243_s17 = sphi %s1289_s17, %s1467_s17   ;;  %s1239_s16 = sphi %s1287_s16, %s1466_s16   ;;  %s1235_s15 = sphi %s1285_s15, %s1465_s15  }
   0x5   : > { %p39_p0 = scmp.ge.s32.totalorder %s37_s22, 4  ;;  %s74_s23 = sadd.s32 1, %s1243_s17 }
   0x6   : > { %p81_p1 = scmp.ne.s32.totalorder %s1243_s17, %s1239_s16  ;;  %p82_p2 = scmp.eq.s32.totalorder %s1255_s20, 0 }
   0x7   : > { %s1471_s22 = smov (%p39_p0, %s37_s22), 0  ;;  %p87_p4 = scmp.ne.s32.totalorder %s1239_s16, %s1235_s15 }
   0x8   : > { %p1321_p3 = por %p82_p2, %p81_p1  ;;  %s69_s25 = ssub.s32 %s1251_s19, %s1471_s22 }
   0x9   : > { %p88_p5 = scmp.eq.s32.totalorder %s925_s21, 0  ;;  %p72_p6 = scmp.eq.s32.totalorder %s69_s25, 0 }
   0xa   : > { %p1108_p8 = scmp.lt.s32.totalorder %s1255_s20, 4  ;;  %s214_s28 = sand.u32 1, %s1243_s17  }
   0xb   : > { %p1328_p7 = por %p88_p5, %p87_p4  ;;  %s972_s29 = sshll.u32 %s1251_s19, 10 }
   0xc   : > { %s1334_s27 = scalar_select %p72_p6, %s1243_s17, %s74_s23  }
   0xd   : > { %s929_s30 = sshll.u32 %s214_s28, 6  ;;  %s1341_s7 = scalar_lea.hbm %s1458_s1, %s972_s29 }
   0xe   : > { %s218_s8 = scalar_lea.vmem [#allocation2], %s929_s30  ;;  %p1345_p9 = pnand %p1108_p8, %p1321_p3 }
   0xf   : > { %s226_s9 = sshll.u32 %s218_s8, 4  ;;  %s1351_s11 = scalar_lea.sflag [#allocation3], %s214_s28  ;;  %s1349_s9 = int_to_ptr.vmem [resolvable:$true] %s226_s9 }
  0x10   : > { %s1175_s12 = scalar_lea.hbm %s1341_s7, 1024  ;;  %p1177_p11 = pneg %p1345_p9 }
  0x11   : > { %p1176_p10 = scmp.ne.s32.totalorder %s1341_s7, %s1175_s12  ;;  %s1180_s15 = scalar_lea.hbm %s1458_s1, 4096 }
  0x12   : > { %p1181_p0 = scmp.lt.u32.totalorder %s1341_s7, %s1458_s1  ;;  %p1182_p1 = scmp.lt.u32.totalorder %s1180_s15, %s1175_s12 }
  0x13   : > { %p1178_p12 = pnand %p1177_p11, %p1176_p10  ;;  %p1184_p3 = scmp.lt.u32.totalorder %s1175_s12, %s1341_s7 }
  0x14   : > { %p1183_p2 = por %p1182_p1, %p1181_p0 }
  0x15   : > { %p1179_p13 = pneg %p1178_p12 }
  0x16   : > { %p1185_p4 = por %p1184_p3, %p1183_p2 }
  0x18   : > { %p1186_p5 = pnand %p1185_p4, %p1179_p13 }
  0x1a   : > { %1189 = shalt.err (!%p1186_p5)
}
  0x1b   : > { %s1190_s24 = scalar_lea.vmem %s1349_s9, 1024  ;;  %s1257_s25 = smov [#allocation2]  }
  0x1c   : > { %p1191_p6 = scmp.ne.s32.totalorder %s1349_s9, %s1190_s24  ;;  %s1195_s28 = sshll.u32 %s1257_s25, 4  ;;  %s1196_s28 = int_to_ptr.vmem [resolvable:$false] %s1195_s28 }
  0x1d   : > { %s1197_s29 = scalar_lea.vmem %s1196_s28, 2048  ;;  %p1198_p12 = scmp.lt.s32.totalorder %s1349_s9, %s1196_s28 }
  0x1e   : > { %p1193_p8 = pnand %p1191_p6, %p1177_p11  ;;  %p1199_p0 = scmp.lt.s32.totalorder %s1197_s29, %s1190_s24 }
  0x20   : > { %p1194_p10 = pneg %p1193_p8  ;;  %p1200_p1 = por %p1199_p0, %p1198_p12 }
  0x22   : > { %p1201_p2 = pnand %p1200_p1, %p1194_p10 }
  0x24   : > { %1204 = shalt.err (!%p1201_p2)
}
  0x25   : > { %s1258_s30 = smov 64   ;;  %s1259_s5 = smov 4  }
  0x26   : > { %1107 = dma.hbm_to_vmem [thread:$0]  (!%p1345_p9), %s1341_s7, 1024, %s1349_s9, %s1351_s11, %s1258_s30, %s1258_s30, %s1259_s5  }
  0x27   : > { %p932_p11 = scmp.ge.s32.totalorder %s1255_s20, 1  ;;  %p234_p13 = scmp.lt.s32.totalorder %s1255_s20, 5 }
  0x29   : > { %p235_p3 = pnand %p932_p11, %p234_p13 }
  0x2a   : > { %s240_s6 = sand.u32 (!%p235_p3), 1, %s1239_s16  }
  0x2b   : > { %238 = sbr.rel (%p235_p3) target bundleno = 344 (0x158), region = 28  ;;  %s933_s8 = sshll.u32 (!%p235_p3), %s240_s6, 6 }
  0x2c   : > { %s241_s12 = scalar_lea.sflag (!%p235_p3), [#allocation3], %s240_s6  ;;  %s1382_s13 = scalar_lea.vmem (!%p235_p3), [#allocation2], %s933_s8 }
  0x32   : > { %1230 = dma.done.wait (%p1328_p7), %s241_s12, 1024  }
  0x33   : > { %1232 = vsyncadd (%p1328_p7), %s241_s12, 4294966272  ;;  %p304_p9 = scmp.lt.s32.totalorder %s1247_s18, 3  ;;  %v1159_v0 = vld [vmem:[%s1382_s13] sm:$0xff]   ;;  %v1160_v1 = vld [vmem:[%s1382_s13 + $0x8] sm:$0xff]  }
  0x34   : > { %1054 = vmatprep.subr.bf16.mxu0 %v1159_v0  ;;  %1086 = vmatprep.subr.bf16.mxu1 %v1159_v0  ;;  %v1161_v2 = vld [vmem:[%s1382_s13 + $0x10] sm:$0xff]   ;;  %v1162_v3 = vld [vmem:[%s1382_s13 + $0x18] sm:$0xff]   ;;  %v1163_v5 = vld [vmem:[%s1382_s13 + $0x20] sm:$0xff]  }
  0x35   : > { %s1473_s18 = smov (!%p304_p9, %s1247_s18), 3  ;;  %1055 = vmatpush3.bf16.msra.mxu0 %v1159_v0  ;;  %1094 = vmatpush3.bf16.msra.mxu1 %v1159_v0  ;;  %v1164_v7 = vld [vmem:[%s1382_s13 + $0x28] sm:$0xff]   ;;  %v1165_v8 = vld [vmem:[%s1382_s13 + $0x30] sm:$0xff]   ;;  %v1166_v9 = vld [vmem:[%s1382_s13 + $0x38] sm:$0xff]  }
  0x36   : > { %s973_s7 = sshll.u32 %s1473_s18, 6  ;;  %1056 = vmatprep.subr.bf16.mxu0 %v1160_v1  ;;  %1087 = vmatprep.subr.bf16.mxu1 %v1160_v1  ;;  %s334_s24 = scalar_lea.vmem %s1460_s3, %s1473_s18 }
  0x37   : > { %s1401_s10 = scalar_lea.vmem %s1457_s0, %s973_s7  ;;  %s1421_s15 = scalar_lea.vmem %s1459_s2, %s973_s7 }
  0x38   : > { %v1167_v4 = vld [vmem:[%s1401_s10] sm:$0xff]   ;;  %v1168_v10 = vld [vmem:[%s1401_s10 + $0x8] sm:$0xff]   ;;  %v1169_v12 = vld [vmem:[%s1401_s10 + $0x10] sm:$0xff]   ;;  %s343_s29 = scalar_lea.vmem %s1461_s4, %s1473_s18 }
  0x39   : > { %1057 = vmatpush3.bf16.msra.mxu0 %v1160_v1  ;;  %1095 = vmatpush3.bf16.msra.mxu1 %v1160_v1  ;;  %v1171_v6 = vld [vmem:[%s1401_s10 + $0x20] sm:$0xff]   ;;  %v1172_v11 = vld [vmem:[%s1401_s10 + $0x28] sm:$0xff]   ;;  %v1173_v13 = vld [vmem:[%s1401_s10 + $0x30] sm:$0xff]  }
  0x3a   : > { %1058 = vmatprep.subr.bf16.mxu0 %v1161_v2  ;;  %1088 = vmatprep.subr.bf16.mxu1 %v1161_v2  ;;  %v1170_v14 = vld [vmem:[%s1401_s10 + $0x18] sm:$0xff]  }
  0x3b   : > { %1070 = vmatprep.mubr.bf16.mxu0 %v1167_v4  ;;  %1078 = vmatprep.mubr.bf16.mxu1 %v1171_v6  ;;  %v1174_v15 = vld [vmem:[%s1401_s10 + $0x38] sm:$0xff]  }
  0x3d   : > { %1059 = vmatpush3.bf16.msra.mxu0 %v1161_v2  ;;  %1096 = vmatpush3.bf16.msra.mxu1 %v1161_v2 }
  0x3e   : > { %1060 = vmatprep.subr.bf16.mxu0 %v1162_v3  ;;  %1089 = vmatprep.subr.bf16.mxu1 %v1162_v3 }
  0x41   : > { %1061 = vmatpush3.bf16.msra.mxu0 %v1162_v3  ;;  %1097 = vmatpush3.bf16.msra.mxu1 %v1162_v3 }
  0x42   : > { %1062 = vmatprep.subr.bf16.mxu0 %v1163_v5  ;;  %1090 = vmatprep.subr.bf16.mxu1 %v1163_v5 }
  0x45   : > { %1063 = vmatpush3.bf16.msra.mxu0 %v1163_v5  ;;  %1098 = vmatpush3.bf16.msra.mxu1 %v1163_v5 }
  0x46   : > { %1064 = vmatprep.subr.bf16.mxu0 %v1164_v7  ;;  %1091 = vmatprep.subr.bf16.mxu1 %v1164_v7 }
  0x49   : > { %1065 = vmatpush3.bf16.msra.mxu0 %v1164_v7  ;;  %1099 = vmatpush3.bf16.msra.mxu1 %v1164_v7 }
  0x4a   : > { %1066 = vmatprep.subr.bf16.mxu0 %v1165_v8  ;;  %1092 = vmatprep.subr.bf16.mxu1 %v1165_v8 }
  0x4d   : > { %1067 = vmatpush3.bf16.msra.mxu0 %v1165_v8  ;;  %1100 = vmatpush3.bf16.msra.mxu1 %v1165_v8 }
  0x4e   : > { %1068 = vmatprep.subr.bf16.mxu0 %v1166_v9  ;;  %1093 = vmatprep.subr.bf16.mxu1 %v1166_v9 }
  0x51   : > { %1069 = vmatpush3.bf16.msra.mxu0 %v1166_v9  ;;  %1101 = vmatpush3.bf16.msra.mxu1 %v1166_v9 }
  0x54   : > { %1071 = vmatmul.mubr.bf16.vlgmr.msra.gmra.mrb[0].mxu0 %v1168_v10  ;;  %1079 = vmatmul.mubr.bf16.vlgmr.msra.gmra.mrb[0].mxu1 %v1172_v11 }
  0x55   : > { %1074 = vmatprep.mubr.bf16.mxu0 %v1169_v12  ;;  %1082 = vmatprep.mubr.bf16.mxu1 %v1173_v13 }
  0x5c   : > { %1075 = vmatmul.mubr.bf16.gmra.mrb[4].mxu0 %v1170_v14  ;;  %1083 = vmatmul.mubr.bf16.gmra.mrb[4].mxu1 %v1174_v15 }
 0x127   : > { %v1072_v16 = vpop.f32.mrb[0].mxu0  ;;  %v1080_v17 = vpop.f32.mrb[0].mxu1 }
 0x128   : > { %v507_v18 = vpop.f32.mrb[1].mxu0  ;;  %v539_v19 = vpop.f32.mrb[1].mxu1  ;;  %v674_v31 = vmul.f32 %v1072_v16, %v1072_v16  ;;  %v682_v3 = vmul.f32 %v1080_v17, %v1080_v17 }
 0x129   : > { %v1073_v20 = vpop.f32.mrb[2].mxu0  ;;  %v1081_v21 = vpop.f32.mrb[2].mxu1  ;;  %v672_v22 = vmul.f32 %v507_v18, %v507_v18  ;;  %v680_v61 = vmul.f32 %v539_v19, %v539_v19 }
 0x12a   : > { %v999_v23 = vpack.c.bf16 %v1073_v20, %v1072_v16  ;;  %v510_v24 = vpop.f32.mrb[3].mxu0  ;;  %v1019_v25 = vpack.c.bf16 %v1081_v21, %v1080_v17  ;;  %v542_v26 = vpop.f32.mrb[3].mxu1  ;;  %v675_v34 = vmul.f32 %v1073_v20, %v1073_v20  ;;  %v683_v6 = vmul.f32 %v1081_v21, %v1081_v21 }
 0x12b   : > { %v994_v27 = vpack.c.bf16 %v510_v24, %v507_v18  ;;  %v650_v28 = vadd.f32 %v510_v24, %v507_v18  ;;  %v673_v29 = vmul.f32 %v510_v24, %v510_v24  ;;  %v1014_v30 = vpack.c.bf16 %v542_v26, %v539_v19 }
 0x12c   : > { %1031 = vst [vmem:[%s1421_s15 + $0x8] sm:$0xff] %v999_v23   ;;  %1035 = vst [vmem:[%s1421_s15 + $0x28] sm:$0xff] %v1019_v25   ;;  %v681_v2 = vmul.f32 %v542_v26, %v542_v26 }
 0x12d   : > { %995 = vst [vmem:[%s1421_s15] sm:$0xff] %v994_v27   ;;  %v651_v32 = vadd.f32 %v1072_v16, %v650_v28  ;;  %v688_v33 = vadd.f32 %v673_v29, %v672_v22  ;;  %1034 = vst [vmem:[%s1421_s15 + $0x20] sm:$0xff] %v1014_v30  }
 0x12f   : > { %v689_v35 = vadd.f32 %v688_v33, %v674_v31  ;;  %v1076_v36 = vpop.f32.mrb[4].mxu0  ;;  %v652_v37 = vadd.f32 %v1073_v20, %v651_v32  ;;  %v1084_v38 = vpop.f32.mrb[4].mxu1 }
 0x130   : > { %v523_v39 = vpop.f32.mrb[5].mxu0  ;;  %v555_v40 = vpop.f32.mrb[5].mxu1  ;;  %v678_v55 = vmul.f32 %v1076_v36, %v1076_v36  ;;  %v686_v15 = vmul.f32 %v1084_v38, %v1084_v38 }
 0x131   : > { %v653_v41 = vadd.f32 %v652_v37, %v523_v39  ;;  %v676_v42 = vmul.f32 %v523_v39, %v523_v39  ;;  %v690_v43 = vadd.f32 %v689_v35, %v675_v34  ;;  %v1077_v44 = vpop.f32.mrb[6].mxu0  ;;  %v1085_v45 = vpop.f32.mrb[6].mxu1  ;;  %v684_v9 = vmul.f32 %v555_v40, %v555_v40 }
 0x132   : > { %v1009_v46 = vpack.c.bf16 %v1077_v44, %v1076_v36  ;;  %v526_v47 = vpop.f32.mrb[7].mxu0  ;;  %v1029_v48 = vpack.c.bf16 %v1085_v45, %v1084_v38  ;;  %v558_v49 = vpop.f32.mrb[7].mxu1  ;;  %v679_v58 = vmul.f32 %v1077_v44, %v1077_v44 }
 0x133   : > { %v691_v50 = vadd.f32 %v690_v43, %v676_v42  ;;  %v1004_v51 = vpack.c.bf16 %v526_v47, %v523_v39  ;;  %v654_v52 = vadd.f32 %v653_v41, %v526_v47  ;;  %v677_v53 = vmul.f32 %v526_v47, %v526_v47 }
 0x134   : > { %1033 = vst [vmem:[%s1421_s15 + $0x18] sm:$0xff] %v1009_v46   ;;  %1037 = vst [vmem:[%s1421_s15 + $0x38] sm:$0xff] %v1029_v48   ;;  %v1024_v54 = vpack.c.bf16 %v558_v49, %v555_v40  ;;  %v685_v14 = vmul.f32 %v558_v49, %v558_v49 }
 0x135   : > { %1032 = vst [vmem:[%s1421_s15 + $0x10] sm:$0xff] %v1004_v51   ;;  %v655_v56 = vadd.f32 %v1076_v36, %v654_v52  ;;  %v692_v57 = vadd.f32 %v691_v50, %v677_v53 }
 0x136   : > { %1036 = vst [vmem:[%s1421_s15 + $0x30] sm:$0xff] %v1024_v54  }
 0x137   : > { %v693_v59 = vadd.f32 %v692_v57, %v678_v55  ;;  %v656_v60 = vadd.f32 %v1077_v44, %v655_v56 }
 0x139   : > { %v657_v62 = vadd.f32 %v656_v60, %v539_v19  ;;  %v694_v63 = vadd.f32 %v693_v59, %v679_v58  ;;  %v687_v19 = vmul.f32 %v1085_v45, %v1085_v45 }
 0x13b   : > { %v695_v0 = vadd.f32 %v694_v63, %v680_v61  ;;  %v658_v1 = vadd.f32 %v657_v62, %v542_v26 }
 0x13d   : > { %v659_v4 = vadd.f32 %v1080_v17, %v658_v1  ;;  %v696_v5 = vadd.f32 %v695_v0, %v681_v2 }
 0x13f   : > { %v697_v7 = vadd.f32 %v696_v5, %v682_v3  ;;  %v660_v8 = vadd.f32 %v1081_v21, %v659_v4 }
 0x141   : > { %v661_v10 = vadd.f32 %v660_v8, %v555_v40  ;;  %v698_v11 = vadd.f32 %v697_v7, %v683_v6 }
 0x143   : > { %v699_v12 = vadd.f32 %v698_v11, %v684_v9  ;;  %v662_v13 = vadd.f32 %v661_v10, %v558_v49 }
 0x145   : > { %v663_v16 = vadd.f32 %v1084_v38, %v662_v13  ;;  %v700_v18 = vadd.f32 %v699_v12, %v685_v14 }
 0x147   : > { %v664_v20 = vadd.f32 %v1085_v45, %v663_v16  ;;  %v701_v22 = vadd.f32 %v700_v18, %v686_v15 }
 0x149   : > { %v665_v23 = vrot.slane %v664_v20, 4  ;;  %v702_v17 = vadd.f32 %v701_v22, %v687_v19 }
 0x14b   : > { %v666_v24 = vadd.f32 %v665_v23, %v664_v20  ;;  %v703_v25 = vrot.slane %v702_v17, 4 }
 0x14d   : > { %v667_v26 = vrot.slane %v666_v24, 2  ;;  %v704_v21 = vadd.f32 %v703_v25, %v702_v17 }
 0x14f   : > { %v668_v27 = vadd.f32 %v667_v26, %v666_v24  ;;  %v705_v28 = vrot.slane %v704_v21, 2 }
 0x151   : > { %v669_v29 = vrot.slane %v668_v27, 1  ;;  %v706_v30 = vadd.f32 %v705_v28, %v704_v21 }
 0x153   : > { %v670_v31 = vadd.f32 %v669_v29, %v668_v27  ;;  %v707_v32 = vrot.slane %v706_v30, 1 }
 0x155   : > { %671 = vst [vmem:[%s334_s24] sm:$0x1] %v670_v31  ;;  %v708_v33 = vadd.f32 %v707_v32, %v706_v30 }
 0x157   : > { %709 = vst [vmem:[%s343_s29] sm:$0x1] %v708_v33 }
 0x158 PF: > { %s18_s20 = sadd.s32 1, %s1255_s20   ;;  %s1465_s15 = smov %s1239_s16 }
 0x159   : > { %p15_p7 = scmp.ge.s32.totalorder %s18_s20, 6   ;;  %s1466_s16 = smov %s1243_s17 }
 0x15a   : > { %s1467_s17 = smov %s1334_s27  ;;  %s1468_s18 = smov %s1251_s19 }
 0x15b   : > { %s1469_s19 = smov %s1471_s22  ;;  %17 = sbr.rel (!%p15_p7) target bundleno = 4 (0x4), region = 95 }
 0x162   :  { %794 = vsyncpa [#allocation3], 1 }
 0x163   :  { %796 = vsyncpa [#allocation3 + $0x1], 1 }

// kernel: generator_forward.8
= control target key start
LH: loop header
LB: loop body
LE: loop exit
PB: predicated region body
PF: predicated region fallthrough
CT: control target
= control target key end

     0   :  { %s2335_s15 = smov 0   ;;  %s2337_s16 = smov 0   ;;  %s2679_s0 = inlined_call_operand.vmem [shape: bf16[4,512,64], index: 0, kind: input, shape index: {}]   ;;  %s2680_s1 = inlined_call_operand.vmem [shape: bf16[4,64,128], index: 1, kind: input, shape index: {}]   ;;  %s2681_s2 = inlined_call_operand.vmem [shape: bf16[4,512,128], index: 2, kind: output, shape index: {0}]   ;;  %s2682_s3 = inlined_call_operand.vmem [shape: f32[4,1,128], index: 3, kind: output, shape index: {1}]   ;;  %s2683_s4 = inlined_call_operand.vmem [shape: f32[4,1,128], index: 4, kind: output, shape index: {2}]  }
   0x1   :  { %s2339_s17 = smov 0  }
   0x2 LB: > { %s34_s18 = sadd.s32 1, %s2304_s16  ;;  %p1711_p0 = scmp.ge.s32.totalorder %s2308_s17, 1  ;;  %s2308_s17 = sphi %s2339_s17, %s15_s17   ;;  %s2304_s16 = sphi %s2337_s16, %s2685_s16   ;;  %s2300_s15 = sphi %s2335_s15, %s2684_s15  }
   0x3   : > { %p36_p1 = scmp.ge.s32.totalorder %s34_s18, 4  ;;  %p220_p2 = scmp.lt.s32.totalorder %s2308_s17, 5 }
   0x5   : > { %s2687_s18 = smov (%p36_p1, %s34_s18), 0  ;;  %p221_p3 = pnand %p1711_p0, %p220_p2 }
   0x6   : > { %p284_p4 = scmp.lt.s32.totalorder (!%p221_p3), %s2300_s15, 3  ;;  %vm589_vm0 = vcmask (!%p221_p3), 523264  }
   0x7   : > { %224 = sbr.rel (%p221_p3) target bundleno = 390 (0x186), region = 28 }
   0xe   : > { %s2689_s15 = smov (!%p284_p4, %s2300_s15), 3 }
   0xf   : > { %s1852_s19 = sshll.u32 %s2689_s15, 8  ;;  %s1853_s20 = sshll.u32 %s2689_s15, 5 }
  0x10   : > { %s300_s23 = scalar_lea.vmem %s2680_s1, %s1853_s20  ;;  %s2365_s26 = scalar_lea.vmem %s2679_s0, %s1852_s19 }
  0x11   : > { %v2250_v0 = vld [vmem:[%s300_s23] sm:$0xff]   ;;  %v2251_v1 = vld [vmem:[%s300_s23 + $0x8] sm:$0xff]   ;;  %v2252_v2 = vld [vmem:[%s300_s23 + $0x10] sm:$0xff]   ;;  %s2436_s29 = scalar_lea.vmem %s2681_s2, %s1852_s19  ;;  %s322_s6 = scalar_lea.vmem %s2682_s3, %s2689_s15 }
  0x12   : > { %2146 = vmatprep.subr.bf16.mxu0 %v2250_v0  ;;  %2218 = vmatprep.subr.bf16.mxu1 %v2250_v0  ;;  %v2254_v3 = vld [vmem:[%s2365_s26] sm:$0xff]   ;;  %v2253_v4 = vld [vmem:[%s300_s23 + $0x18] sm:$0xff]   ;;  %v2255_v5 = vld [vmem:[%s2365_s26 + $0x8] sm:$0xff]   ;;  %s331_s9 = scalar_lea.vmem %s2683_s4, %s2689_s15 }
  0x13   : > { %2147 = vmatpush3.bf16.msra.mxu0 %v2250_v0  ;;  %2222 = vmatpush3.bf16.msra.mxu1 %v2250_v0  ;;  %v2256_v6 = vld [vmem:[%s2365_s26 + $0x10] sm:$0xff]   ;;  %v2257_v7 = vld [vmem:[%s2365_s26 + $0x18] sm:$0xff]   ;;  %v2270_v8 = vld [vmem:[%s2365_s26 + $0x80] sm:$0xff]  }
  0x14   : > { %2148 = vmatprep.subr.bf16.mxu0 %v2251_v1  ;;  %2219 = vmatprep.subr.bf16.mxu1 %v2251_v1  ;;  %v2271_v9 = vld [vmem:[%s2365_s26 + $0x88] sm:$0xff]   ;;  %v2272_v10 = vld [vmem:[%s2365_s26 + $0x90] sm:$0xff]   ;;  %v2258_v11 = vld [vmem:[%s2365_s26 + $0x20] sm:$0xff]  }
  0x15   : > { %2154 = vmatprep.mubr.msk.bf16.mxu0 %vm589_vm0, %v2254_v3  ;;  %2186 = vmatprep.mubr.msk.bf16.mxu1 %vm589_vm0, %v2270_v8  ;;  %v2273_v12 = vld [vmem:[%s2365_s26 + $0x98] sm:$0xff]   ;;  %v2274_v13 = vld [vmem:[%s2365_s26 + $0xa0] sm:$0xff]   ;;  %v2259_v14 = vld [vmem:[%s2365_s26 + $0x28] sm:$0xff]  }
  0x16   : > { %v2260_v15 = vld [vmem:[%s2365_s26 + $0x30] sm:$0xff]   ;;  %v2275_v16 = vld [vmem:[%s2365_s26 + $0xa8] sm:$0xff]   ;;  %v2261_v18 = vld [vmem:[%s2365_s26 + $0x38] sm:$0xff]  }
  0x17   : > { %2149 = vmatpush3.bf16.msra.mxu0 %v2251_v1  ;;  %2223 = vmatpush3.bf16.msra.mxu1 %v2251_v1  ;;  %v2276_v17 = vld [vmem:[%s2365_s26 + $0xb0] sm:$0xff]   ;;  %v2262_v19 = vld [vmem:[%s2365_s26 + $0x40] sm:$0xff]   ;;  %v2277_v20 = vld [vmem:[%s2365_s26 + $0xb8] sm:$0xff]  }
  0x18   : > { %2150 = vmatprep.subr.bf16.mxu0 %v2252_v2  ;;  %2220 = vmatprep.subr.bf16.mxu1 %v2252_v2  ;;  %v2278_v21 = vld [vmem:[%s2365_s26 + $0xc0] sm:$0xff]   ;;  %v2263_v22 = vld [vmem:[%s2365_s26 + $0x48] sm:$0xff]   ;;  %v2264_v23 = vld [vmem:[%s2365_s26 + $0x50] sm:$0xff]  }
  0x19   : > { %v2279_v24 = vld [vmem:[%s2365_s26 + $0xc8] sm:$0xff]   ;;  %v2280_v25 = vld [vmem:[%s2365_s26 + $0xd0] sm:$0xff]   ;;  %v2265_v26 = vld [vmem:[%s2365_s26 + $0x58] sm:$0xff]  }
  0x1a   : > { %v2266_v27 = vld [vmem:[%s2365_s26 + $0x60] sm:$0xff]   ;;  %v2281_v28 = vld [vmem:[%s2365_s26 + $0xd8] sm:$0xff]   ;;  %v2267_v30 = vld [vmem:[%s2365_s26 + $0x68] sm:$0xff]  }
  0x1b   : > { %2151 = vmatpush3.bf16.msra.mxu0 %v2252_v2  ;;  %2224 = vmatpush3.bf16.msra.mxu1 %v2252_v2  ;;  %v2282_v29 = vld [vmem:[%s2365_s26 + $0xe0] sm:$0xff]   ;;  %v2268_v31 = vld [vmem:[%s2365_s26 + $0x70] sm:$0xff]   ;;  %v2283_v32 = vld [vmem:[%s2365_s26 + $0xe8] sm:$0xff]  }
  0x1c   : > { %2152 = vmatprep.subr.bf16.mxu0 %v2253_v4  ;;  %2221 = vmatprep.subr.bf16.mxu1 %v2253_v4  ;;  %v2284_v33 = vld [vmem:[%s2365_s26 + $0xf0] sm:$0xff]   ;;  %v2269_v34 = vld [vmem:[%s2365_s26 + $0x78] sm:$0xff]  }
  0x1d   : > { %v2285_v35 = vld [vmem:[%s2365_s26 + $0xf8] sm:$0xff]  }
  0x1f   : > { %2153 = vmatpush3.bf16.msra.mxu0 %v2253_v4  ;;  %2225 = vmatpush3.bf16.msra.mxu1 %v2253_v4 }
  0x22   : > { %2155 = vmatmul.mubr.msk.bf16.vlgmr.msra.gmra.mrb[0].mxu0 %vm589_vm0, %v2255_v5  ;;  %2187 = vmatmul.mubr.msk.bf16.vlgmr.msra.gmra.mrb[0].mxu1 %vm589_vm0, %v2271_v9 }
  0x23   : > { %2158 = vmatprep.mubr.msk.bf16.mxu0 %vm589_vm0, %v2256_v6  ;;  %2190 = vmatprep.mubr.msk.bf16.mxu1 %vm589_vm0, %v2272_v10 }
  0x2a   : > { %2159 = vmatmul.mubr.msk.bf16.gmra.mrb[4].mxu0 %vm589_vm0, %v2257_v7  ;;  %2191 = vmatmul.mubr.msk.bf16.gmra.mrb[4].mxu1 %vm589_vm0, %v2273_v12 }
  0x2b   : > { %2162 = vmatprep.mubr.msk.bf16.mxu0 %vm589_vm0, %v2258_v11  ;;  %2194 = vmatprep.mubr.msk.bf16.mxu1 %vm589_vm0, %v2274_v13 }
  0x32   : > { %2163 = vmatmul.mubr.msk.bf16.gmra.mrb[8].mxu0 %vm589_vm0, %v2259_v14  ;;  %2195 = vmatmul.mubr.msk.bf16.gmra.mrb[8].mxu1 %vm589_vm0, %v2275_v16 }
  0x33   : > { %2166 = vmatprep.mubr.msk.bf16.mxu0 %vm589_vm0, %v2260_v15  ;;  %2198 = vmatprep.mubr.msk.bf16.mxu1 %vm589_vm0, %v2276_v17 }
  0x3a   : > { %2167 = vmatmul.mubr.msk.bf16.gmra.mrb[12].mxu0 %vm589_vm0, %v2261_v18  ;;  %2199 = vmatmul.mubr.msk.bf16.gmra.mrb[12].mxu1 %vm589_vm0, %v2277_v20 }
  0x3b   : > { %2170 = vmatprep.mubr.msk.bf16.mxu0 %vm589_vm0, %v2262_v19  ;;  %2202 = vmatprep.mubr.msk.bf16.mxu1 %vm589_vm0, %v2278_v21 }
  0x42   : > { %2171 = vmatmul.mubr.msk.bf16.gmra.mrb[16].mxu0 %vm589_vm0, %v2263_v22  ;;  %2203 = vmatmul.mubr.msk.bf16.gmra.mrb[16].mxu1 %vm589_vm0, %v2279_v24 }
  0x43   : > { %2174 = vmatprep.mubr.msk.bf16.mxu0 %vm589_vm0, %v2264_v23  ;;  %2206 = vmatprep.mubr.msk.bf16.mxu1 %vm589_vm0, %v2280_v25 }
  0x4a   : > { %2175 = vmatmul.mubr.msk.bf16.gmra.mrb[20].mxu0 %vm589_vm0, %v2265_v26  ;;  %2207 = vmatmul.mubr.msk.bf16.gmra.mrb[20].mxu1 %vm589_vm0, %v2281_v28 }
  0x4b   : > { %2178 = vmatprep.mubr.msk.bf16.mxu0 %vm589_vm0, %v2266_v27  ;;  %2210 = vmatprep.mubr.msk.bf16.mxu1 %vm589_vm0, %v2282_v29 }
  0x52   : > { %2179 = vmatmul.mubr.msk.bf16.gmra.mrb[24].mxu0 %vm589_vm0, %v2267_v30  ;;  %2211 = vmatmul.mubr.msk.bf16.gmra.mrb[24].mxu1 %vm589_vm0, %v2283_v32 }
  0x53   : > { %2182 = vmatprep.mubr.msk.bf16.mxu0 %vm589_vm0, %v2268_v31  ;;  %2214 = vmatprep.mubr.msk.bf16.mxu1 %vm589_vm0, %v2284_v33 }
  0x5a   : > { %2183 = vmatmul.mubr.msk.bf16.gmra.mrb[28].mxu0 %vm589_vm0, %v2269_v34  ;;  %2215 = vmatmul.mubr.msk.bf16.gmra.mrb[28].mxu1 %vm589_vm0, %v2285_v35 }
  0xf5   : > { %v2156_v36 = vpop.f32.mrb[0].mxu0  ;;  %v2439_v45 = vpop.f32.mrb[0].mxu1 }
  0xf6   : > { %v720_v37 = vpop.f32.mrb[1].mxu0  ;;  %v1367_v46 = vmul.f32 %v2156_v36, %v2156_v36  ;;  %v2442_v49 = vpop.f32.mrb[1].mxu1 }
  0xf7   : > { %v2157_v38 = vpop.f32.mrb[2].mxu0  ;;  %v1365_v41 = vmul.f32 %v720_v37, %v720_v37  ;;  %v2444_v50 = vpop.f32.mrb[2].mxu1 }
  0xf8   : > { %v1927_v39 = vpack.c.bf16 %v2157_v38, %v2156_v36  ;;  %v723_v40 = vpop.f32.mrb[3].mxu0  ;;  %v1368_v51 = vmul.f32 %v2157_v38, %v2157_v38  ;;  %v2007_v55 = vpack.c.bf16 %v2444_v50, %v2439_v45  ;;  %v2448_v56 = vpop.f32.mrb[3].mxu1 }
  0xf9   : > { %v1922_v42 = vpack.c.bf16 %v723_v40, %v720_v37  ;;  %v1295_v43 = vadd.f32 %v723_v40, %v720_v37  ;;  %v1366_v44 = vmul.f32 %v723_v40, %v723_v40  ;;  %v2002_v58 = vpack.c.bf16 %v2448_v56, %v2442_v49 }
  0xfa   : > { %2079 = vst [vmem:[%s2436_s29 + $0x8] sm:$0xff] %v1927_v39   ;;  %2095 = vst [vmem:[%s2436_s29 + $0x88] sm:$0xff] %v2007_v55  }
  0xfb   : > { %1923 = vst [vmem:[%s2436_s29] sm:$0xff] %v1922_v42   ;;  %v1296_v47 = vadd.f32 %v2156_v36, %v1295_v43  ;;  %v1429_v48 = vadd.f32 %v1366_v44, %v1365_v41  ;;  %2094 = vst [vmem:[%s2436_s29 + $0x80] sm:$0xff] %v2002_v58  }
  0xfd   : > { %v1430_v52 = vadd.f32 %v1429_v48, %v1367_v46  ;;  %v2160_v53 = vpop.f32.mrb[4].mxu0  ;;  %v1297_v54 = vadd.f32 %v2157_v38, %v1296_v47  ;;  %v2455_v5 = vpop.f32.mrb[4].mxu1 }
  0xfe   : > { %v736_v57 = vpop.f32.mrb[5].mxu0  ;;  %v1371_v6 = vmul.f32 %v2160_v53, %v2160_v53  ;;  %v2458_v9 = vpop.f32.mrb[5].mxu1 }
  0xff   : > { %v1298_v59 = vadd.f32 %v1297_v54, %v736_v57  ;;  %v1369_v60 = vmul.f32 %v736_v57, %v736_v57  ;;  %v1431_v61 = vadd.f32 %v1430_v52, %v1368_v51  ;;  %v2161_v62 = vpop.f32.mrb[6].mxu0  ;;  %v2460_v10 = vpop.f32.mrb[6].mxu1 }
 0x100   : > { %v1937_v63 = vpack.c.bf16 %v2161_v62, %v2160_v53  ;;  %v739_v0 = vpop.f32.mrb[7].mxu0  ;;  %v1372_v11 = vmul.f32 %v2161_v62, %v2161_v62  ;;  %v2017_v15 = vpack.c.bf16 %v2460_v10, %v2455_v5  ;;  %v2464_v16 = vpop.f32.mrb[7].mxu1 }
 0x101   : > { %v1432_v1 = vadd.f32 %v1431_v61, %v1369_v60  ;;  %v1932_v2 = vpack.c.bf16 %v739_v0, %v736_v57  ;;  %v1299_v3 = vadd.f32 %v1298_v59, %v739_v0  ;;  %v1370_v4 = vmul.f32 %v739_v0, %v739_v0 }
 0x102   : > { %2081 = vst [vmem:[%s2436_s29 + $0x18] sm:$0xff] %v1937_v63   ;;  %v2012_v18 = vpack.c.bf16 %v2464_v16, %v2458_v9  ;;  %2097 = vst [vmem:[%s2436_s29 + $0x98] sm:$0xff] %v2017_v15  }
 0x103   : > { %2080 = vst [vmem:[%s2436_s29 + $0x10] sm:$0xff] %v1932_v2   ;;  %v1300_v7 = vadd.f32 %v2160_v53, %v1299_v3  ;;  %v1433_v8 = vadd.f32 %v1432_v1, %v1370_v4 }
 0x104   : > { %2096 = vst [vmem:[%s2436_s29 + $0x90] sm:$0xff] %v2012_v18  }
 0x105   : > { %v1434_v12 = vadd.f32 %v1433_v8, %v1371_v6  ;;  %v2164_v13 = vpop.f32.mrb[8].mxu0  ;;  %v1301_v14 = vadd.f32 %v2161_v62, %v1300_v7  ;;  %v2471_v29 = vpop.f32.mrb[8].mxu1 }
 0x106   : > { %v752_v17 = vpop.f32.mrb[9].mxu0  ;;  %v1375_v30 = vmul.f32 %v2164_v13, %v2164_v13  ;;  %v2474_v33 = vpop.f32.mrb[9].mxu1 }
 0x107   : > { %v1302_v19 = vadd.f32 %v1301_v14, %v752_v17  ;;  %v1373_v20 = vmul.f32 %v752_v17, %v752_v17  ;;  %v1435_v21 = vadd.f32 %v1434_v12, %v1372_v11  ;;  %v2165_v22 = vpop.f32.mrb[10].mxu0  ;;  %v2476_v34 = vpop.f32.mrb[10].mxu1 }
 0x108   : > { %v1947_v23 = vpack.c.bf16 %v2165_v22, %v2164_v13  ;;  %v755_v24 = vpop.f32.mrb[11].mxu0  ;;  %v1376_v35 = vmul.f32 %v2165_v22, %v2165_v22  ;;  %v2027_v39 = vpack.c.bf16 %v2476_v34, %v2471_v29  ;;  %v2480_v40 = vpop.f32.mrb[11].mxu1 }
 0x109   : > { %v1436_v25 = vadd.f32 %v1435_v21, %v1373_v20  ;;  %v1942_v26 = vpack.c.bf16 %v755_v24, %v752_v17  ;;  %v1303_v27 = vadd.f32 %v1302_v19, %v755_v24  ;;  %v1374_v28 = vmul.f32 %v755_v24, %v755_v24 }
 0x10a   : > { %2083 = vst [vmem:[%s2436_s29 + $0x28] sm:$0xff] %v1947_v23   ;;  %v2022_v42 = vpack.c.bf16 %v2480_v40, %v2474_v33  ;;  %2099 = vst [vmem:[%s2436_s29 + $0xa8] sm:$0xff] %v2027_v39  }
 0x10b   : > { %2082 = vst [vmem:[%s2436_s29 + $0x20] sm:$0xff] %v1942_v26   ;;  %v1304_v31 = vadd.f32 %v2164_v13, %v1303_v27  ;;  %v1437_v32 = vadd.f32 %v1436_v25, %v1374_v28 }
 0x10c   : > { %2098 = vst [vmem:[%s2436_s29 + $0xa0] sm:$0xff] %v2022_v42  }
 0x10d   : > { %v1438_v36 = vadd.f32 %v1437_v32, %v1375_v30  ;;  %v2168_v37 = vpop.f32.mrb[12].mxu0  ;;  %v1305_v38 = vadd.f32 %v2165_v22, %v1304_v31  ;;  %v2487_v57 = vpop.f32.mrb[12].mxu1 }
 0x10e   : > { %v768_v41 = vpop.f32.mrb[13].mxu0  ;;  %v1379_v58 = vmul.f32 %v2168_v37, %v2168_v37  ;;  %v2490_v61 = vpop.f32.mrb[13].mxu1 }
 0x10f   : > { %v1306_v43 = vadd.f32 %v1305_v38, %v768_v41  ;;  %v1377_v44 = vmul.f32 %v768_v41, %v768_v41  ;;  %v1439_v46 = vadd.f32 %v1438_v36, %v1376_v35  ;;  %v2169_v47 = vpop.f32.mrb[14].mxu0  ;;  %v2492_v62 = vpop.f32.mrb[14].mxu1 }
 0x110   : > { %v1957_v48 = vpack.c.bf16 %v2169_v47, %v2168_v37  ;;  %v771_v51 = vpop.f32.mrb[15].mxu0  ;;  %v1380_v63 = vmul.f32 %v2169_v47, %v2169_v47  ;;  %v2037_v3 = vpack.c.bf16 %v2492_v62, %v2487_v57  ;;  %v2496_v4 = vpop.f32.mrb[15].mxu1 }
 0x111   : > { %v1440_v52 = vadd.f32 %v1439_v46, %v1377_v44  ;;  %v1952_v53 = vpack.c.bf16 %v771_v51, %v768_v41  ;;  %v1307_v54 = vadd.f32 %v1306_v43, %v771_v51  ;;  %v1378_v55 = vmul.f32 %v771_v51, %v771_v51 }
 0x112   : > { %2085 = vst [vmem:[%s2436_s29 + $0x38] sm:$0xff] %v1957_v48   ;;  %v2032_v7 = vpack.c.bf16 %v2496_v4, %v2490_v61  ;;  %2101 = vst [vmem:[%s2436_s29 + $0xb8] sm:$0xff] %v2037_v3  }
 0x113   : > { %2084 = vst [vmem:[%s2436_s29 + $0x30] sm:$0xff] %v1952_v53   ;;  %v1308_v59 = vadd.f32 %v2168_v37, %v1307_v54  ;;  %v1441_v60 = vadd.f32 %v1440_v52, %v1378_v55 }
 0x114   : > { %2100 = vst [vmem:[%s2436_s29 + $0xb0] sm:$0xff] %v2032_v7  }
 0x115   : > { %v1442_v0 = vadd.f32 %v1441_v60, %v1379_v58  ;;  %v2172_v1 = vpop.f32.mrb[16].mxu0  ;;  %v1309_v2 = vadd.f32 %v2169_v47, %v1308_v59  ;;  %v2503_v21 = vpop.f32.mrb[16].mxu1 }
 0x116   : > { %v784_v6 = vpop.f32.mrb[17].mxu0  ;;  %v1383_v22 = vmul.f32 %v2172_v1, %v2172_v1  ;;  %v2506_v25 = vpop.f32.mrb[17].mxu1 }
 0x117   : > { %v1310_v8 = vadd.f32 %v1309_v2, %v784_v6  ;;  %v1381_v11 = vmul.f32 %v784_v6, %v784_v6  ;;  %v1443_v12 = vadd.f32 %v1442_v0, %v1380_v63  ;;  %v2173_v13 = vpop.f32.mrb[18].mxu0  ;;  %v2508_v26 = vpop.f32.mrb[18].mxu1 }
 0x118   : > { %v1967_v14 = vpack.c.bf16 %v2173_v13, %v2172_v1  ;;  %v787_v15 = vpop.f32.mrb[19].mxu0  ;;  %v1384_v27 = vmul.f32 %v2173_v13, %v2173_v13  ;;  %v2047_v32 = vpack.c.bf16 %v2508_v26, %v2503_v21  ;;  %v2512_v35 = vpop.f32.mrb[19].mxu1 }
 0x119   : > { %v1444_v17 = vadd.f32 %v1443_v12, %v1381_v11  ;;  %v1962_v18 = vpack.c.bf16 %v787_v15, %v784_v6  ;;  %v1311_v19 = vadd.f32 %v1310_v8, %v787_v15  ;;  %v1382_v20 = vmul.f32 %v787_v15, %v787_v15 }
 0x11a   : > { %2087 = vst [vmem:[%s2436_s29 + $0x48] sm:$0xff] %v1967_v14   ;;  %v2042_v37 = vpack.c.bf16 %v2512_v35, %v2506_v25  ;;  %2103 = vst [vmem:[%s2436_s29 + $0xc8] sm:$0xff] %v2047_v32  }
 0x11b   : > { %2086 = vst [vmem:[%s2436_s29 + $0x40] sm:$0xff] %v1962_v18   ;;  %v1312_v23 = vadd.f32 %v2172_v1, %v1311_v19  ;;  %v1445_v24 = vadd.f32 %v1444_v17, %v1382_v20 }
 0x11c   : > { %2102 = vst [vmem:[%s2436_s29 + $0xc0] sm:$0xff] %v2042_v37  }
 0x11d   : > { %v1446_v28 = vadd.f32 %v1445_v24, %v1383_v22  ;;  %v2176_v30 = vpop.f32.mrb[20].mxu0  ;;  %v1313_v31 = vadd.f32 %v2173_v13, %v1312_v23  ;;  %v2519_v52 = vpop.f32.mrb[20].mxu1 }
 0x11e   : > { %v800_v36 = vpop.f32.mrb[21].mxu0  ;;  %v1387_v53 = vmul.f32 %v2176_v30, %v2176_v30  ;;  %v2522_v58 = vpop.f32.mrb[21].mxu1 }
 0x11f   : > { %v1314_v38 = vadd.f32 %v1313_v31, %v800_v36  ;;  %v1385_v39 = vmul.f32 %v800_v36, %v800_v36  ;;  %v1447_v41 = vadd.f32 %v1446_v28, %v1384_v27  ;;  %v2177_v42 = vpop.f32.mrb[22].mxu0  ;;  %v2524_v59 = vpop.f32.mrb[22].mxu1 }
 0x120   : > { %v1977_v43 = vpack.c.bf16 %v2177_v42, %v2176_v30  ;;  %v803_v44 = vpop.f32.mrb[23].mxu0  ;;  %v1388_v60 = vmul.f32 %v2177_v42, %v2177_v42  ;;  %v2057_v2 = vpack.c.bf16 %v2524_v59, %v2519_v52  ;;  %v2528_v3 = vpop.f32.mrb[23].mxu1 }
 0x121   : > { %v1448_v46 = vadd.f32 %v1447_v41, %v1385_v39  ;;  %v1972_v47 = vpack.c.bf16 %v803_v44, %v800_v36  ;;  %v1315_v48 = vadd.f32 %v1314_v38, %v803_v44  ;;  %v1386_v51 = vmul.f32 %v803_v44, %v803_v44 }
 0x122   : > { %2089 = vst [vmem:[%s2436_s29 + $0x58] sm:$0xff] %v1977_v43   ;;  %v2052_v7 = vpack.c.bf16 %v2528_v3, %v2522_v58  ;;  %2105 = vst [vmem:[%s2436_s29 + $0xd8] sm:$0xff] %v2057_v2  }
 0x123   : > { %2088 = vst [vmem:[%s2436_s29 + $0x50] sm:$0xff] %v1972_v47   ;;  %v1316_v54 = vadd.f32 %v2176_v30, %v1315_v48  ;;  %v1449_v55 = vadd.f32 %v1448_v46, %v1386_v51 }
 0x124   : > { %2104 = vst [vmem:[%s2436_s29 + $0xd0] sm:$0xff] %v2052_v7   ;;  %v1397_v7 = vmul.f32 %v2442_v49, %v2442_v49 }
 0x125   : > { %v1450_v63 = vadd.f32 %v1449_v55, %v1387_v53  ;;  %v2180_v0 = vpop.f32.mrb[24].mxu0  ;;  %v1317_v1 = vadd.f32 %v2177_v42, %v1316_v54  ;;  %v2535_v22 = vpop.f32.mrb[24].mxu1 }
 0x126   : > { %v816_v6 = vpop.f32.mrb[25].mxu0  ;;  %v1391_v23 = vmul.f32 %v2180_v0, %v2180_v0  ;;  %v2538_v28 = vpop.f32.mrb[25].mxu1 }
 0x127   : > { %v1318_v8 = vadd.f32 %v1317_v1, %v816_v6  ;;  %v1389_v11 = vmul.f32 %v816_v6, %v816_v6  ;;  %v1451_v12 = vadd.f32 %v1450_v63, %v1388_v60  ;;  %v2181_v13 = vpop.f32.mrb[26].mxu0  ;;  %v2540_v30 = vpop.f32.mrb[26].mxu1 }
 0x128   : > { %v1987_v14 = vpack.c.bf16 %v2181_v13, %v2180_v0  ;;  %v819_v15 = vpop.f32.mrb[27].mxu0  ;;  %v1392_v31 = vmul.f32 %v2181_v13, %v2181_v13  ;;  %v2067_v38 = vpack.c.bf16 %v2540_v30, %v2535_v22  ;;  %v2544_v39 = vpop.f32.mrb[27].mxu1 }
 0x129   : > { %v1452_v17 = vadd.f32 %v1451_v12, %v1389_v11  ;;  %v1982_v18 = vpack.c.bf16 %v819_v15, %v816_v6  ;;  %v1319_v19 = vadd.f32 %v1318_v8, %v819_v15  ;;  %v1390_v20 = vmul.f32 %v819_v15, %v819_v15 }
 0x12a   : > { %2091 = vst [vmem:[%s2436_s29 + $0x68] sm:$0xff] %v1987_v14   ;;  %v2062_v42 = vpack.c.bf16 %v2544_v39, %v2538_v28  ;;  %2107 = vst [vmem:[%s2436_s29 + $0xe8] sm:$0xff] %v2067_v38   ;;  %v1401_v38 = vmul.f32 %v2458_v9, %v2458_v9 }
 0x12b   : > { %2090 = vst [vmem:[%s2436_s29 + $0x60] sm:$0xff] %v1982_v18   ;;  %v1320_v24 = vadd.f32 %v2180_v0, %v1319_v19  ;;  %v1453_v27 = vadd.f32 %v1452_v17, %v1390_v20 }
 0x12c   : > { %2106 = vst [vmem:[%s2436_s29 + $0xe0] sm:$0xff] %v2062_v42  }
 0x12d   : > { %v1454_v32 = vadd.f32 %v1453_v27, %v1391_v23  ;;  %v2184_v36 = vpop.f32.mrb[28].mxu0  ;;  %v1321_v37 = vadd.f32 %v2181_v13, %v1320_v24  ;;  %v2551_v63 = vpop.f32.mrb[28].mxu1  ;;  %v1398_v24 = vmul.f32 %v2448_v56, %v2448_v56  ;;  %v1399_v27 = vmul.f32 %v2439_v45, %v2439_v45 }
 0x12e   : > { %v832_v41 = vpop.f32.mrb[29].mxu0  ;;  %v1395_v0 = vmul.f32 %v2184_v36, %v2184_v36  ;;  %v2554_v6 = vpop.f32.mrb[29].mxu1 }
 0x12f   : > { %v1322_v43 = vadd.f32 %v1321_v37, %v832_v41  ;;  %v1393_v44 = vmul.f32 %v832_v41, %v832_v41  ;;  %v1455_v46 = vadd.f32 %v1454_v32, %v1392_v31  ;;  %v2185_v47 = vpop.f32.mrb[30].mxu0  ;;  %v2558_v8 = vpop.f32.mrb[30].mxu1 }
 0x130   : > { %v1997_v48 = vpack.c.bf16 %v2185_v47, %v2184_v36  ;;  %v835_v51 = vpop.f32.mrb[31].mxu0  ;;  %v1396_v11 = vmul.f32 %v2185_v47, %v2185_v47  ;;  %v2077_v14 = vpack.c.bf16 %v2558_v8, %v2551_v63  ;;  %v2562_v15 = vpop.f32.mrb[31].mxu1 }
 0x131   : > { %v1456_v53 = vadd.f32 %v1455_v46, %v1393_v44  ;;  %v1992_v54 = vpack.c.bf16 %v835_v51, %v832_v41  ;;  %v1323_v55 = vadd.f32 %v1322_v43, %v835_v51  ;;  %v1394_v60 = vmul.f32 %v835_v51, %v835_v51 }
 0x132   : > { %2093 = vst [vmem:[%s2436_s29 + $0x78] sm:$0xff] %v1997_v48   ;;  %v2072_v17 = vpack.c.bf16 %v2562_v15, %v2554_v6  ;;  %2109 = vst [vmem:[%s2436_s29 + $0xf8] sm:$0xff] %v2077_v14   ;;  %v1402_v44 = vmul.f32 %v2464_v16, %v2464_v16  ;;  %v1410_v14 = vmul.f32 %v2496_v4, %v2496_v4 }
 0x133   : > { %2092 = vst [vmem:[%s2436_s29 + $0x70] sm:$0xff] %v1992_v54   ;;  %v1324_v1 = vadd.f32 %v2184_v36, %v1323_v55  ;;  %v1457_v2 = vadd.f32 %v1456_v53, %v1394_v60  ;;  %v1400_v36 = vmul.f32 %v2444_v50, %v2444_v50  ;;  %v1406_v60 = vmul.f32 %v2480_v40, %v2480_v40 }
 0x134   : > { %2108 = vst [vmem:[%s2436_s29 + $0xf0] sm:$0xff] %v2072_v17  }
 0x135   : > { %v1458_v12 = vadd.f32 %v1457_v2, %v1395_v0  ;;  %v1325_v13 = vadd.f32 %v2185_v47, %v1324_v1 }
 0x137   : > { %v1326_v18 = vadd.f32 %v1325_v13, %v2442_v49  ;;  %v1459_v19 = vadd.f32 %v1458_v12, %v1396_v11 }
 0x139   : > { %v1460_v20 = vadd.f32 %v1459_v19, %v1397_v7  ;;  %v1327_v23 = vadd.f32 %v1326_v18, %v2448_v56 }
 0x13b   : > { %v1328_v31 = vadd.f32 %v2439_v45, %v1327_v23  ;;  %v1461_v32 = vadd.f32 %v1460_v20, %v1398_v24  ;;  %v1403_v45 = vmul.f32 %v2455_v5, %v2455_v5 }
 0x13d   : > { %v1462_v37 = vadd.f32 %v1461_v32, %v1399_v27  ;;  %v1329_v49 = vadd.f32 %v2444_v50, %v1328_v31  ;;  %v1404_v50 = vmul.f32 %v2460_v10, %v2460_v10  ;;  %v1414_v31 = vmul.f32 %v2512_v35, %v2512_v35 }
 0x13f   : > { %v1330_v41 = vadd.f32 %v1329_v49, %v2458_v9  ;;  %v1463_v42 = vadd.f32 %v1462_v37, %v1400_v36  ;;  %v1405_v9 = vmul.f32 %v2474_v33, %v2474_v33 }
 0x141   : > { %v1464_v43 = vadd.f32 %v1463_v42, %v1401_v38  ;;  %v1331_v56 = vadd.f32 %v1330_v41, %v2464_v16 }
 0x143   : > { %v1332_v46 = vadd.f32 %v2455_v5, %v1331_v56  ;;  %v1465_v47 = vadd.f32 %v1464_v43, %v1402_v44  ;;  %v1407_v5 = vmul.f32 %v2471_v29, %v2471_v29  ;;  %v1418_v43 = vmul.f32 %v2528_v3, %v2528_v3 }
 0x145   : > { %v1466_v48 = vadd.f32 %v1465_v47, %v1403_v45  ;;  %v1333_v51 = vadd.f32 %v2460_v10, %v1332_v46  ;;  %v1408_v10 = vmul.f32 %v2476_v34, %v2476_v34 }
 0x147   : > { %v1334_v53 = vadd.f32 %v1333_v51, %v2474_v33  ;;  %v1467_v54 = vadd.f32 %v1466_v48, %v1404_v50  ;;  %v1409_v33 = vmul.f32 %v2490_v61, %v2490_v61  ;;  %v1422_v51 = vmul.f32 %v2544_v39, %v2544_v39 }
 0x149   : > { %v1468_v55 = vadd.f32 %v1467_v54, %v1405_v9  ;;  %v1335_v16 = vadd.f32 %v1334_v53, %v2480_v40 }
 0x14b   : > { %v1336_v0 = vadd.f32 %v2471_v29, %v1335_v16  ;;  %v1469_v1 = vadd.f32 %v1468_v55, %v1406_v60  ;;  %v1411_v29 = vmul.f32 %v2487_v57, %v2487_v57 }
 0x14d   : > { %v1470_v2 = vadd.f32 %v1469_v1, %v1407_v5  ;;  %v1337_v7 = vadd.f32 %v2476_v34, %v1336_v0  ;;  %v1412_v34 = vmul.f32 %v2492_v62, %v2492_v62  ;;  %v1426_v0 = vmul.f32 %v2562_v15, %v2562_v15 }
 0x14f   : > { %v1338_v11 = vadd.f32 %v1337_v7, %v2490_v61  ;;  %v1471_v12 = vadd.f32 %v1470_v2, %v1408_v10  ;;  %v1413_v61 = vmul.f32 %v2506_v25, %v2506_v25 }
 0x151   : > { %v1472_v13 = vadd.f32 %v1471_v12, %v1409_v33  ;;  %v1339_v40 = vadd.f32 %v1338_v11, %v2496_v4 }
 0x153   : > { %v1340_v17 = vadd.f32 %v2487_v57, %v1339_v40  ;;  %v1473_v18 = vadd.f32 %v1472_v13, %v1410_v14  ;;  %v1415_v57 = vmul.f32 %v2503_v21, %v2503_v21 }
 0x155   : > { %v1474_v19 = vadd.f32 %v1473_v18, %v1411_v29  ;;  %v1341_v20 = vadd.f32 %v2492_v62, %v1340_v17  ;;  %v1416_v62 = vmul.f32 %v2508_v26, %v2508_v26 }
 0x157   : > { %v1342_v23 = vadd.f32 %v1341_v20, %v2506_v25  ;;  %v1475_v24 = vadd.f32 %v1474_v19, %v1412_v34  ;;  %v1417_v25 = vmul.f32 %v2522_v58, %v2522_v58 }
 0x159   : > { %v1476_v27 = vadd.f32 %v1475_v24, %v1413_v61  ;;  %v1343_v4 = vadd.f32 %v1342_v23, %v2512_v35 }
 0x15b   : > { %v1344_v32 = vadd.f32 %v2503_v21, %v1343_v4  ;;  %v1477_v36 = vadd.f32 %v1476_v27, %v1414_v31  ;;  %v1419_v21 = vmul.f32 %v2519_v52, %v2519_v52 }
 0x15d   : > { %v1478_v37 = vadd.f32 %v1477_v36, %v1415_v57  ;;  %v1345_v49 = vadd.f32 %v2508_v26, %v1344_v32  ;;  %v1420_v26 = vmul.f32 %v2524_v59, %v2524_v59 }
 0x15f   : > { %v1346_v38 = vadd.f32 %v1345_v49, %v2522_v58  ;;  %v1479_v41 = vadd.f32 %v1478_v37, %v1416_v62  ;;  %v1421_v58 = vmul.f32 %v2538_v28, %v2538_v28 }
 0x161   : > { %v1480_v42 = vadd.f32 %v1479_v41, %v1417_v25  ;;  %v1347_v35 = vadd.f32 %v1346_v38, %v2528_v3 }
 0x163   : > { %v1348_v56 = vadd.f32 %v2519_v52, %v1347_v35  ;;  %v1481_v44 = vadd.f32 %v1480_v42, %v1418_v43  ;;  %v1423_v52 = vmul.f32 %v2535_v22, %v2535_v22 }
 0x165   : > { %v1482_v45 = vadd.f32 %v1481_v44, %v1419_v21  ;;  %v1349_v46 = vadd.f32 %v2524_v59, %v1348_v56  ;;  %v1424_v59 = vmul.f32 %v2540_v30, %v2540_v30 }
 0x167   : > { %v1350_v47 = vadd.f32 %v1349_v46, %v2538_v28  ;;  %v1483_v50 = vadd.f32 %v1482_v45, %v1420_v26  ;;  %v1425_v28 = vmul.f32 %v2554_v6, %v2554_v6 }
 0x169   : > { %v1484_v48 = vadd.f32 %v1483_v50, %v1421_v58  ;;  %v1351_v3 = vadd.f32 %v1350_v47, %v2544_v39 }
 0x16b   : > { %v1352_v9 = vadd.f32 %v2535_v22, %v1351_v3  ;;  %v1485_v53 = vadd.f32 %v1484_v48, %v1422_v51  ;;  %v1427_v22 = vmul.f32 %v2551_v63, %v2551_v63 }
 0x16d   : > { %v1486_v54 = vadd.f32 %v1485_v53, %v1423_v52  ;;  %v1353_v55 = vadd.f32 %v2540_v30, %v1352_v9  ;;  %v1428_v30 = vmul.f32 %v2558_v8, %v2558_v8 }
 0x16f   : > { %v1354_v16 = vadd.f32 %v1353_v55, %v2554_v6  ;;  %v1487_v60 = vadd.f32 %v1486_v54, %v1424_v59 }
 0x171   : > { %v1488_v5 = vadd.f32 %v1487_v60, %v1425_v28  ;;  %v1355_v39 = vadd.f32 %v1354_v16, %v2562_v15 }
 0x173   : > { %v1356_v1 = vadd.f32 %v2551_v63, %v1355_v39  ;;  %v1489_v10 = vadd.f32 %v1488_v5, %v1426_v0 }
 0x175   : > { %v1357_v6 = vadd.f32 %v2558_v8, %v1356_v1  ;;  %v1490_v2 = vadd.f32 %v1489_v10, %v1427_v22 }
 0x177   : > { %v1358_v7 = vrot.slane %v1357_v6, 4  ;;  %v1491_v33 = vadd.f32 %v1490_v2, %v1428_v30 }
 0x179   : > { %v1359_v11 = vadd.f32 %v1358_v7, %v1357_v6  ;;  %v1492_v12 = vrot.slane %v1491_v33, 4 }
 0x17b   : > { %v1360_v13 = vrot.slane %v1359_v11, 2  ;;  %v1493_v15 = vadd.f32 %v1492_v12, %v1491_v33 }
 0x17d   : > { %v1361_v40 = vadd.f32 %v1360_v13, %v1359_v11  ;;  %v1494_v14 = vrot.slane %v1493_v15, 2 }
 0x17f   : > { %v1362_v29 = vrot.slane %v1361_v40, 1  ;;  %v1495_v17 = vadd.f32 %v1494_v14, %v1493_v15 }
 0x181   : > { %v1363_v63 = vadd.f32 %v1362_v29, %v1361_v40  ;;  %v1496_v18 = vrot.slane %v1495_v17, 1 }
 0x183   : > { %1364 = vst [vmem:[%s322_s6] sm:$0x1] %v1363_v63  ;;  %v1497_v8 = vadd.f32 %v1496_v18, %v1495_v17 }
 0x185   : > { %1498 = vst [vmem:[%s331_s9] sm:$0x1] %v1497_v8 }
 0x186 PF: > { %s15_s17 = sadd.s32 1, %s2308_s17   ;;  %s2684_s15 = smov %s2304_s16 }
 0x187   : > { %p12_p5 = scmp.ge.s32.totalorder %s15_s17, 6   ;;  %s2685_s16 = smov %s2687_s18 }
 0x189   :  { %14 = sbr.rel (!%p12_p5) target bundleno = 2 (0x2), region = 85 }

// kernel: generator_forward.9
= control target key start
LH: loop header
LB: loop body
LE: loop exit
PB: predicated region body
PF: predicated region fallthrough
CT: control target
= control target key end

     0   :  { %s1933_s9 = smov 0   ;;  %s1935_s10 = smov 0   ;;  %s2094_s0 = inlined_call_operand.vmem [shape: bf16[4,2048,32], index: 0, kind: input, shape index: {}]   ;;  %s2095_s1 = inlined_call_operand.vmem [shape: bf16[4,32,128], index: 1, kind: input, shape index: {}]   ;;  %s2096_s2 = inlined_call_operand.vmem [shape: bf16[4,2048,128], index: 2, kind: output, shape index: {}]  }
   0x1   :  { %s1937_s11 = smov 0   ;;  %s1939_s12 = smov 0  }
   0x2   :  { %s1941_s13 = smov 0  }
   0x3 LB: > { %s27_s14 = sadd.s32 1, %s1908_s11  ;;  %s31_s15 = sadd.s32 1, %s1912_s12  ;;  %s1916_s13 = sphi %s1941_s13, %s12_s13   ;;  %s1912_s12 = sphi %s1939_s12, %s2100_s12   ;;  %s1908_s11 = sphi %s1937_s11, %s2099_s11   ;;  %s1904_s10 = sphi %s1935_s10, %s2098_s10   ;;  %s1900_s9 = sphi %s1933_s9, %s2097_s9  }
   0x4   : > { %p29_p0 = scmp.ge.s32.totalorder %s27_s14, 4  ;;  %p1301_p1 = scmp.ge.s32.totalorder %s1916_s13, 1 }
   0x5   : > { %p157_p2 = scmp.lt.s32.totalorder %s1916_s13, 17 }
   0x6   : > { %s2102_s14 = smov (%p29_p0, %s27_s14), 0  ;;  %s2104_s15 = smov (!%p29_p0, %s31_s15), %s1912_s12 }
   0x7   : > { %p158_p3 = pnand %p1301_p1, %p157_p2  ;;  %p33_p4 = scmp.ge.s32.totalorder %s2104_s15, 4 }
   0x8   : > { %s1302_s16 = sshll.u32 (!%p158_p3), %s1900_s9, 6  ;;  %p199_p5 = scmp.lt.s32.totalorder (!%p158_p3), %s1904_s10, 3  ;;  %vm470_vm0 = vcmask (!%p158_p3), 261120  }
   0x9   : > { %s2106_s15 = smov (%p33_p4, %s2104_s15), 0  ;;  %161 = sbr.rel (%p158_p3) target bundleno = 302 (0x12e), region = 28 }
   0xa   : > { %p201_p6 = scmp.lt.s32.totalorder (!%p158_p3), %s1302_s16, 255 }
  0x10   : > { %s2108_s10 = smov (!%p199_p5, %s1904_s10), 3  ;;  %s2110_s16 = smov (!%p201_p6, %s1302_s16), 255 }
  0x11   : > { %s1303_s17 = sshll.u32 %s2108_s10, 8  ;;  %s1442_s18 = sshll.u32 %s2108_s10, 4 }
  0x12   : > { %s1963_s19 = sadd.s32 %s1303_s17, %s2110_s16  ;;  %s215_s22 = scalar_lea.vmem %s2095_s1, %s1442_s18 }
  0x13   : > { %s1304_s23 = sshll.u32 %s1963_s19, 2  ;;  %v1844_v0 = vld [vmem:[%s215_s22] sm:$0xff]   ;;  %v1845_v1 = vld [vmem:[%s215_s22 + $0x8] sm:$0xff]  }
  0x14   : > { %s1974_s26 = scalar_lea.vmem %s2094_s0, %s1304_s23  ;;  %1732 = vmatprep.subr.bf16.mxu0 %v1844_v0  ;;  %1800 = vmatprep.subr.bf16.mxu1 %v1844_v0  ;;  %s2045_s29 = scalar_lea.vmem %s2096_s2, %s1304_s23 }
  0x15   : > { %v1846_v2 = vld [vmem:[%s1974_s26] sm:$0xff]   ;;  %1733 = vmatpush3.bf16.msra.mxu0 %v1844_v0  ;;  %1802 = vmatpush3.bf16.msra.mxu1 %v1844_v0  ;;  %v1848_v4 = vld [vmem:[%s1974_s26 + $0x8] sm:$0xff]   ;;  %v1850_v6 = vld [vmem:[%s1974_s26 + $0x10] sm:$0xff]  }
  0x16   : > { %v1847_v3 = vld [vmem:[%s1974_s26 + $0x80] sm:$0xff]   ;;  %1734 = vmatprep.subr.bf16.mxu0 %v1845_v1  ;;  %1801 = vmatprep.subr.bf16.mxu1 %v1845_v1  ;;  %v1849_v5 = vld [vmem:[%s1974_s26 + $0x88] sm:$0xff]   ;;  %v1851_v7 = vld [vmem:[%s1974_s26 + $0x90] sm:$0xff]  }
  0x17   : > { %1736 = vmatprep.mubr.msk.bf16.mxu0 %vm470_vm0, %v1846_v2  ;;  %1768 = vmatprep.mubr.msk.bf16.mxu1 %vm470_vm0, %v1847_v3  ;;  %v1852_v8 = vld [vmem:[%s1974_s26 + $0x18] sm:$0xff]   ;;  %v1854_v10 = vld [vmem:[%s1974_s26 + $0x20] sm:$0xff]   ;;  %v1856_v12 = vld [vmem:[%s1974_s26 + $0x28] sm:$0xff]  }
  0x18   : > { %v1853_v9 = vld [vmem:[%s1974_s26 + $0x98] sm:$0xff]   ;;  %v1855_v11 = vld [vmem:[%s1974_s26 + $0xa0] sm:$0xff]   ;;  %v1857_v13 = vld [vmem:[%s1974_s26 + $0xa8] sm:$0xff]  }
  0x19   : > { %1735 = vmatpush3.bf16.msra.mxu0 %v1845_v1  ;;  %1803 = vmatpush3.bf16.msra.mxu1 %v1845_v1  ;;  %v1858_v14 = vld [vmem:[%s1974_s26 + $0x30] sm:$0xff]   ;;  %v1860_v16 = vld [vmem:[%s1974_s26 + $0x38] sm:$0xff]   ;;  %v1862_v18 = vld [vmem:[%s1974_s26 + $0x40] sm:$0xff]  }
  0x1a   : > { %v1859_v15 = vld [vmem:[%s1974_s26 + $0xb0] sm:$0xff]   ;;  %v1861_v17 = vld [vmem:[%s1974_s26 + $0xb8] sm:$0xff]   ;;  %v1863_v19 = vld [vmem:[%s1974_s26 + $0xc0] sm:$0xff]  }
  0x1b   : > { %v1864_v20 = vld [vmem:[%s1974_s26 + $0x48] sm:$0xff]   ;;  %v1866_v22 = vld [vmem:[%s1974_s26 + $0x50] sm:$0xff]   ;;  %v1868_v24 = vld [vmem:[%s1974_s26 + $0x58] sm:$0xff]  }
  0x1c   : > { %1737 = vmatmul.mubr.msk.bf16.vlgmr.msra.gmra.mrb[0].mxu0 %vm470_vm0, %v1848_v4  ;;  %1769 = vmatmul.mubr.msk.bf16.vlgmr.msra.gmra.mrb[0].mxu1 %vm470_vm0, %v1849_v5  ;;  %v1865_v21 = vld [vmem:[%s1974_s26 + $0xc8] sm:$0xff]   ;;  %v1867_v23 = vld [vmem:[%s1974_s26 + $0xd0] sm:$0xff]   ;;  %v1869_v25 = vld [vmem:[%s1974_s26 + $0xd8] sm:$0xff]  }
  0x1d   : > { %1740 = vmatprep.mubr.msk.bf16.mxu0 %vm470_vm0, %v1850_v6  ;;  %1772 = vmatprep.mubr.msk.bf16.mxu1 %vm470_vm0, %v1851_v7  ;;  %v1870_v26 = vld [vmem:[%s1974_s26 + $0x60] sm:$0xff]   ;;  %v1872_v28 = vld [vmem:[%s1974_s26 + $0x68] sm:$0xff]   ;;  %v1874_v30 = vld [vmem:[%s1974_s26 + $0x70] sm:$0xff]  }
  0x1e   : > { %v1871_v27 = vld [vmem:[%s1974_s26 + $0xe0] sm:$0xff]   ;;  %v1873_v29 = vld [vmem:[%s1974_s26 + $0xe8] sm:$0xff]   ;;  %v1875_v31 = vld [vmem:[%s1974_s26 + $0xf0] sm:$0xff]  }
  0x1f   : > { %v1876_v32 = vld [vmem:[%s1974_s26 + $0x78] sm:$0xff]  }
  0x20   : > { %v1877_v33 = vld [vmem:[%s1974_s26 + $0xf8] sm:$0xff]  }
  0x24   : > { %1741 = vmatmul.mubr.msk.bf16.gmra.mrb[4].mxu0 %vm470_vm0, %v1852_v8  ;;  %1773 = vmatmul.mubr.msk.bf16.gmra.mrb[4].mxu1 %vm470_vm0, %v1853_v9 }
  0x25   : > { %1744 = vmatprep.mubr.msk.bf16.mxu0 %vm470_vm0, %v1854_v10  ;;  %1776 = vmatprep.mubr.msk.bf16.mxu1 %vm470_vm0, %v1855_v11 }
  0x2c   : > { %1745 = vmatmul.mubr.msk.bf16.gmra.mrb[8].mxu0 %vm470_vm0, %v1856_v12  ;;  %1777 = vmatmul.mubr.msk.bf16.gmra.mrb[8].mxu1 %vm470_vm0, %v1857_v13 }
  0x2d   : > { %1748 = vmatprep.mubr.msk.bf16.mxu0 %vm470_vm0, %v1858_v14  ;;  %1780 = vmatprep.mubr.msk.bf16.mxu1 %vm470_vm0, %v1859_v15 }
  0x34   : > { %1749 = vmatmul.mubr.msk.bf16.gmra.mrb[12].mxu0 %vm470_vm0, %v1860_v16  ;;  %1781 = vmatmul.mubr.msk.bf16.gmra.mrb[12].mxu1 %vm470_vm0, %v1861_v17 }
  0x35   : > { %1752 = vmatprep.mubr.msk.bf16.mxu0 %vm470_vm0, %v1862_v18  ;;  %1784 = vmatprep.mubr.msk.bf16.mxu1 %vm470_vm0, %v1863_v19 }
  0x3c   : > { %1753 = vmatmul.mubr.msk.bf16.gmra.mrb[16].mxu0 %vm470_vm0, %v1864_v20  ;;  %1785 = vmatmul.mubr.msk.bf16.gmra.mrb[16].mxu1 %vm470_vm0, %v1865_v21 }
  0x3d   : > { %1756 = vmatprep.mubr.msk.bf16.mxu0 %vm470_vm0, %v1866_v22  ;;  %1788 = vmatprep.mubr.msk.bf16.mxu1 %vm470_vm0, %v1867_v23 }
  0x44   : > { %1757 = vmatmul.mubr.msk.bf16.gmra.mrb[20].mxu0 %vm470_vm0, %v1868_v24  ;;  %1789 = vmatmul.mubr.msk.bf16.gmra.mrb[20].mxu1 %vm470_vm0, %v1869_v25 }
  0x45   : > { %1760 = vmatprep.mubr.msk.bf16.mxu0 %vm470_vm0, %v1870_v26  ;;  %1792 = vmatprep.mubr.msk.bf16.mxu1 %vm470_vm0, %v1871_v27 }
  0x4c   : > { %1761 = vmatmul.mubr.msk.bf16.gmra.mrb[24].mxu0 %vm470_vm0, %v1872_v28  ;;  %1793 = vmatmul.mubr.msk.bf16.gmra.mrb[24].mxu1 %vm470_vm0, %v1873_v29 }
  0x4d   : > { %1764 = vmatprep.mubr.msk.bf16.mxu0 %vm470_vm0, %v1874_v30  ;;  %1796 = vmatprep.mubr.msk.bf16.mxu1 %vm470_vm0, %v1875_v31 }
  0x54   : > { %1765 = vmatmul.mubr.msk.bf16.gmra.mrb[28].mxu0 %vm470_vm0, %v1876_v32  ;;  %1797 = vmatmul.mubr.msk.bf16.gmra.mrb[28].mxu1 %vm470_vm0, %v1877_v33 }
  0xef   : > { %v1738_v34 = vpop.f32.mrb[0].mxu0  ;;  %v1770_v35 = vpop.f32.mrb[0].mxu1 }
  0xf0   : > { %v601_v36 = vpop.f32.mrb[1].mxu0  ;;  %v729_v37 = vpop.f32.mrb[1].mxu1 }
  0xf1   : > { %v1739_v38 = vpop.f32.mrb[2].mxu0  ;;  %v1771_v39 = vpop.f32.mrb[2].mxu1 }
  0xf2   : > { %v1515_v40 = vpack.c.bf16 %v1739_v38, %v1738_v34  ;;  %v1595_v41 = vpack.c.bf16 %v1771_v39, %v1770_v35  ;;  %v604_v42 = vpop.f32.mrb[3].mxu0  ;;  %v732_v43 = vpop.f32.mrb[3].mxu1 }
  0xf3   : > { %v1510_v44 = vpack.c.bf16 %v604_v42, %v601_v36  ;;  %v1590_v45 = vpack.c.bf16 %v732_v43, %v729_v37 }
  0xf4   : > { %1667 = vst [vmem:[%s2045_s29 + $0x8] sm:$0xff] %v1515_v40   ;;  %1683 = vst [vmem:[%s2045_s29 + $0x88] sm:$0xff] %v1595_v41  }
  0xf5   : > { %1511 = vst [vmem:[%s2045_s29] sm:$0xff] %v1510_v44   ;;  %1682 = vst [vmem:[%s2045_s29 + $0x80] sm:$0xff] %v1590_v45  }
  0xf7   : > { %v1742_v46 = vpop.f32.mrb[4].mxu0  ;;  %v1774_v47 = vpop.f32.mrb[4].mxu1 }
  0xf8   : > { %v617_v48 = vpop.f32.mrb[5].mxu0  ;;  %v745_v49 = vpop.f32.mrb[5].mxu1 }
  0xf9   : > { %v1743_v50 = vpop.f32.mrb[6].mxu0  ;;  %v1775_v51 = vpop.f32.mrb[6].mxu1 }
  0xfa   : > { %v1525_v52 = vpack.c.bf16 %v1743_v50, %v1742_v46  ;;  %v1605_v53 = vpack.c.bf16 %v1775_v51, %v1774_v47  ;;  %v620_v54 = vpop.f32.mrb[7].mxu0  ;;  %v748_v55 = vpop.f32.mrb[7].mxu1 }
  0xfb   : > { %v1520_v56 = vpack.c.bf16 %v620_v54, %v617_v48  ;;  %v1600_v57 = vpack.c.bf16 %v748_v55, %v745_v49 }
  0xfc   : > { %1669 = vst [vmem:[%s2045_s29 + $0x18] sm:$0xff] %v1525_v52   ;;  %1685 = vst [vmem:[%s2045_s29 + $0x98] sm:$0xff] %v1605_v53  }
  0xfd   : > { %1668 = vst [vmem:[%s2045_s29 + $0x10] sm:$0xff] %v1520_v56   ;;  %1684 = vst [vmem:[%s2045_s29 + $0x90] sm:$0xff] %v1600_v57  }
  0xff   : > { %v1746_v58 = vpop.f32.mrb[8].mxu0  ;;  %v1778_v59 = vpop.f32.mrb[8].mxu1 }
 0x100   : > { %v633_v60 = vpop.f32.mrb[9].mxu0  ;;  %v761_v61 = vpop.f32.mrb[9].mxu1 }
 0x101   : > { %v1747_v62 = vpop.f32.mrb[10].mxu0  ;;  %v1779_v63 = vpop.f32.mrb[10].mxu1 }
 0x102   : > { %v1535_v0 = vpack.c.bf16 %v1747_v62, %v1746_v58  ;;  %v1615_v1 = vpack.c.bf16 %v1779_v63, %v1778_v59  ;;  %v636_v2 = vpop.f32.mrb[11].mxu0  ;;  %v764_v3 = vpop.f32.mrb[11].mxu1 }
 0x103   : > { %v1530_v4 = vpack.c.bf16 %v636_v2, %v633_v60  ;;  %v1610_v5 = vpack.c.bf16 %v764_v3, %v761_v61 }
 0x104   : > { %1671 = vst [vmem:[%s2045_s29 + $0x28] sm:$0xff] %v1535_v0   ;;  %1687 = vst [vmem:[%s2045_s29 + $0xa8] sm:$0xff] %v1615_v1  }
 0x105   : > { %1670 = vst [vmem:[%s2045_s29 + $0x20] sm:$0xff] %v1530_v4   ;;  %1686 = vst [vmem:[%s2045_s29 + $0xa0] sm:$0xff] %v1610_v5  }
 0x107   : > { %v1750_v6 = vpop.f32.mrb[12].mxu0  ;;  %v1782_v7 = vpop.f32.mrb[12].mxu1 }
 0x108   : > { %v649_v8 = vpop.f32.mrb[13].mxu0  ;;  %v777_v9 = vpop.f32.mrb[13].mxu1 }
 0x109   : > { %v1751_v10 = vpop.f32.mrb[14].mxu0  ;;  %v1783_v11 = vpop.f32.mrb[14].mxu1 }
 0x10a   : > { %v1545_v12 = vpack.c.bf16 %v1751_v10, %v1750_v6  ;;  %v1625_v13 = vpack.c.bf16 %v1783_v11, %v1782_v7  ;;  %v652_v14 = vpop.f32.mrb[15].mxu0  ;;  %v780_v15 = vpop.f32.mrb[15].mxu1 }
 0x10b   : > { %v1540_v16 = vpack.c.bf16 %v652_v14, %v649_v8  ;;  %v1620_v17 = vpack.c.bf16 %v780_v15, %v777_v9 }
 0x10c   : > { %1673 = vst [vmem:[%s2045_s29 + $0x38] sm:$0xff] %v1545_v12   ;;  %1689 = vst [vmem:[%s2045_s29 + $0xb8] sm:$0xff] %v1625_v13  }
 0x10d   : > { %1672 = vst [vmem:[%s2045_s29 + $0x30] sm:$0xff] %v1540_v16   ;;  %1688 = vst [vmem:[%s2045_s29 + $0xb0] sm:$0xff] %v1620_v17  }
 0x10f   : > { %v1754_v18 = vpop.f32.mrb[16].mxu0  ;;  %v1786_v19 = vpop.f32.mrb[16].mxu1 }
 0x110   : > { %v665_v20 = vpop.f32.mrb[17].mxu0  ;;  %v793_v21 = vpop.f32.mrb[17].mxu1 }
 0x111   : > { %v1755_v22 = vpop.f32.mrb[18].mxu0  ;;  %v1787_v23 = vpop.f32.mrb[18].mxu1 }
 0x112   : > { %v1555_v24 = vpack.c.bf16 %v1755_v22, %v1754_v18  ;;  %v1635_v25 = vpack.c.bf16 %v1787_v23, %v1786_v19  ;;  %v668_v26 = vpop.f32.mrb[19].mxu0  ;;  %v796_v27 = vpop.f32.mrb[19].mxu1 }
 0x113   : > { %v1550_v28 = vpack.c.bf16 %v668_v26, %v665_v20  ;;  %v1630_v29 = vpack.c.bf16 %v796_v27, %v793_v21 }
 0x114   : > { %1675 = vst [vmem:[%s2045_s29 + $0x48] sm:$0xff] %v1555_v24   ;;  %1691 = vst [vmem:[%s2045_s29 + $0xc8] sm:$0xff] %v1635_v25  }
 0x115   : > { %1674 = vst [vmem:[%s2045_s29 + $0x40] sm:$0xff] %v1550_v28   ;;  %1690 = vst [vmem:[%s2045_s29 + $0xc0] sm:$0xff] %v1630_v29  }
 0x117   : > { %v1758_v30 = vpop.f32.mrb[20].mxu0  ;;  %v1790_v31 = vpop.f32.mrb[20].mxu1 }
 0x118   : > { %v681_v32 = vpop.f32.mrb[21].mxu0  ;;  %v809_v33 = vpop.f32.mrb[21].mxu1 }
 0x119   : > { %v1759_v34 = vpop.f32.mrb[22].mxu0  ;;  %v1791_v35 = vpop.f32.mrb[22].mxu1 }
 0x11a   : > { %v1565_v36 = vpack.c.bf16 %v1759_v34, %v1758_v30  ;;  %v1645_v37 = vpack.c.bf16 %v1791_v35, %v1790_v31  ;;  %v684_v38 = vpop.f32.mrb[23].mxu0  ;;  %v812_v39 = vpop.f32.mrb[23].mxu1 }
 0x11b   : > { %v1560_v40 = vpack.c.bf16 %v684_v38, %v681_v32  ;;  %v1640_v41 = vpack.c.bf16 %v812_v39, %v809_v33 }
 0x11c   : > { %1677 = vst [vmem:[%s2045_s29 + $0x58] sm:$0xff] %v1565_v36   ;;  %1693 = vst [vmem:[%s2045_s29 + $0xd8] sm:$0xff] %v1645_v37  }
 0x11d   : > { %1676 = vst [vmem:[%s2045_s29 + $0x50] sm:$0xff] %v1560_v40   ;;  %1692 = vst [vmem:[%s2045_s29 + $0xd0] sm:$0xff] %v1640_v41  }
 0x11f   : > { %v1762_v42 = vpop.f32.mrb[24].mxu0  ;;  %v1794_v43 = vpop.f32.mrb[24].mxu1 }
 0x120   : > { %v697_v44 = vpop.f32.mrb[25].mxu0  ;;  %v825_v45 = vpop.f32.mrb[25].mxu1 }
 0x121   : > { %v1763_v46 = vpop.f32.mrb[26].mxu0  ;;  %v1795_v47 = vpop.f32.mrb[26].mxu1 }
 0x122   : > { %v1575_v48 = vpack.c.bf16 %v1763_v46, %v1762_v42  ;;  %v1655_v49 = vpack.c.bf16 %v1795_v47, %v1794_v43  ;;  %v700_v50 = vpop.f32.mrb[27].mxu0  ;;  %v828_v51 = vpop.f32.mrb[27].mxu1 }
 0x123   : > { %v1570_v52 = vpack.c.bf16 %v700_v50, %v697_v44  ;;  %v1650_v53 = vpack.c.bf16 %v828_v51, %v825_v45 }
 0x124   : > { %1679 = vst [vmem:[%s2045_s29 + $0x68] sm:$0xff] %v1575_v48   ;;  %1695 = vst [vmem:[%s2045_s29 + $0xe8] sm:$0xff] %v1655_v49  }
 0x125   : > { %1678 = vst [vmem:[%s2045_s29 + $0x60] sm:$0xff] %v1570_v52   ;;  %1694 = vst [vmem:[%s2045_s29 + $0xe0] sm:$0xff] %v1650_v53  }
 0x127   : > { %v1766_v54 = vpop.f32.mrb[28].mxu0  ;;  %v1798_v55 = vpop.f32.mrb[28].mxu1 }
 0x128   : > { %v713_v56 = vpop.f32.mrb[29].mxu0  ;;  %v841_v57 = vpop.f32.mrb[29].mxu1 }
 0x129   : > { %v1767_v58 = vpop.f32.mrb[30].mxu0  ;;  %v1799_v59 = vpop.f32.mrb[30].mxu1 }
 0x12a   : > { %v1585_v60 = vpack.c.bf16 %v1767_v58, %v1766_v54  ;;  %v1665_v61 = vpack.c.bf16 %v1799_v59, %v1798_v55  ;;  %v716_v62 = vpop.f32.mrb[31].mxu0  ;;  %v844_v63 = vpop.f32.mrb[31].mxu1 }
 0x12b   : > { %v1580_v0 = vpack.c.bf16 %v716_v62, %v713_v56  ;;  %v1660_v1 = vpack.c.bf16 %v844_v63, %v841_v57 }
 0x12c   : > { %1681 = vst [vmem:[%s2045_s29 + $0x78] sm:$0xff] %v1585_v60   ;;  %1697 = vst [vmem:[%s2045_s29 + $0xf8] sm:$0xff] %v1665_v61  }
 0x12d   : > { %1680 = vst [vmem:[%s2045_s29 + $0x70] sm:$0xff] %v1580_v0   ;;  %1696 = vst [vmem:[%s2045_s29 + $0xf0] sm:$0xff] %v1660_v1  }
 0x12e PF: > { %s12_s13 = sadd.s32 1, %s1916_s13   ;;  %s2097_s9 = smov %s1908_s11 }
 0x12f   : > { %p9_p7 = scmp.ge.s32.totalorder %s12_s13, 18   ;;  %s2098_s10 = smov %s1912_s12 }
 0x130   : > { %s2099_s11 = smov %s2102_s14  ;;  %s2100_s12 = smov %s2106_s15 }
 0x131   :  { %11 = sbr.rel (!%p9_p7) target bundleno = 3 (0x3), region = 61 }

</bundles_post_ra>
